<compile_context>
chip_gen: v7x
topology: tpu7x:2x2x1
jax: 0.10.0
libtpu: 0.0.40
codegen_flags: <defaults>
</compile_context>

<pallas_src>
import functools

import jax
import jax.numpy as jnp
from jax.experimental import pallas as pl
from jax.experimental.pallas import tpu as pltpu


# ----------------------------------------------------------------------------
# Fused per-(batch-tile, block) kernel
# ----------------------------------------------------------------------------

def _shared_transformer_kernel(
        keep_ref, q_in_ref,
        wqkv_ref, bqkv_ref, wmisc_ref, vecs_ref, lnf_ref,
        out_ref, x_scratch, *, num_heads, eps):
    blk = pl.program_id(1)

    TB, T, H = x_scratch.shape
    M = TB * T
    dh = H // num_heads
    scale = 1.0 / (dh ** 0.5)

    keep3 = keep_ref[...].astype(jnp.float32)                 # (TB, T, 1)
    keep = keep3.reshape(M, 1)                                # (M, 1)

    # (Re)initialize the resident activation at the first block of each tile:
    #   queries = emb_dropout(queries) (identity) ; queries *= ~timeline_mask
    @pl.when(blk == 0)
    def _():
        x_scratch[...] = q_in_ref[...].astype(jnp.float32) * keep3

    # ---- per-block parameters (VMEM-resident stacks, dynamic block index) ---
    vecs = vecs_ref[blk]                                      # (8, H)  f32
    ln1_g, ln1_b = vecs[0:1], vecs[1:2]
    ln2_g, ln2_b = vecs[2:3], vecs[3:4]
    bo, b1, b2 = vecs[4:5], vecs[5:6], vecs[6:7]
    wqkv = wqkv_ref[blk]                                      # (H, 3H) bf16
    bqkv = bqkv_ref[blk]                                      # (1, 3H) f32
    wmisc = wmisc_ref[blk]                                    # (3H, H) bf16
    wo, w1, w2 = wmisc[0:H], wmisc[H:2 * H], wmisc[2 * H:3 * H]

    def layernorm(v, g, b):
        mu = jnp.mean(v, axis=-1, keepdims=True)
        vc = v - mu
        var = jnp.mean(vc * vc, axis=-1, keepdims=True)
        return vc * jax.lax.rsqrt(var + eps) * g + b

    x = x_scratch[...].reshape(M, H)                          # residual (f32)

    # ---- attention layernorm:  Q = LN1(queries) -----------------------------
    qn = layernorm(x, ln1_g, ln1_b)

    # ---- fused QKV projection: one MXU matmul on bf16 operands --------------
    # rows [LN(x); x] -> Q from LN'd rows, K/V from the raw residual rows.
    stacked = jnp.concatenate([qn, x], axis=0).astype(jnp.bfloat16)   # (2M, H)
    proj = jnp.dot(stacked, wqkv, preferred_element_type=jnp.float32) + bqkv
    q = proj[:M, :H] * scale
    k = proj[M:, H:2 * H]
    v = proj[M:, 2 * H:]

    # ---- block-diagonal multi-head attention ---------------------------------
    # heads stacked along the sublane/M axis via lane masks (no lane slicing);
    # one QK^T and one P@V matmul per sequence of the batch tile.
    lane = jax.lax.broadcasted_iota(jnp.int32, (1, H), 1)
    hmasks = [((lane >= h * dh) & (lane < (h + 1) * dh)).astype(jnp.float32)
              for h in range(num_heads)]
    row_t = jax.lax.broadcasted_iota(jnp.int32, (T, T), 0)
    col_t = jax.lax.broadcasted_iota(jnp.int32, (T, T), 1)
    causal = jnp.concatenate([row_t >= col_t] * num_heads, axis=0)  # (nh*T, T)

    ctx_rows = []
    for b in range(TB):                                       # static, tiny tile
        lo = b * T
        qb, kb, vb = q[lo:lo + T], k[lo:lo + T], v[lo:lo + T]
        q_stk = jnp.concatenate([qb * hmasks[h] for h in range(num_heads)],
                                axis=0)                       # (nh*T, H)
        s = jax.lax.dot_general(q_stk, kb, (((1,), (1,)), ((), ())),
                                precision=jax.lax.Precision.HIGHEST,
                                preferred_element_type=jnp.float32)  # (nh*T, T)
        s = jnp.where(causal, s, jnp.float32(-1e30))
        m = jnp.max(s, axis=-1, keepdims=True)
        e = jnp.exp(s - m)
        p = e / jnp.sum(e, axis=-1, keepdims=True)            # exact softmax
        ctx_stk = jnp.dot(p, vb, precision=jax.lax.Precision.HIGHEST,
                          preferred_element_type=jnp.float32)  # (nh*T, H)
        ctx_b = ctx_stk[0:T] * hmasks[0]
        for h in range(1, num_heads):
            ctx_b = ctx_b + ctx_stk[h * T:(h + 1) * T] * hmasks[h]
        ctx_rows.append(ctx_b)                                # (T, H)
    ctx = jnp.concatenate(ctx_rows, axis=0)                   # (M, H)

    attn_out = jnp.dot(ctx.astype(jnp.bfloat16), wo,
                       preferred_element_type=jnp.float32) + bo
    xq = attn_out + qn                                        # queries += Q

    # ---- forward layernorm + PointWiseFeedForward (+residual) + timeline mask
    y = layernorm(xq, ln2_g, ln2_b)
    h1 = jnp.maximum(
        jnp.dot(y.astype(jnp.bfloat16), w1,
                preferred_element_type=jnp.float32) + b1, 0.0)
    y2 = jnp.dot(h1.astype(jnp.bfloat16), w2,
                 preferred_element_type=jnp.float32) + b2 + y
    y2 = y2 * keep                                            # *= ~timeline_mask

    x_scratch[...] = y2.reshape(TB, T, H)

    # ---- final LayerNorm, stored once per batch tile at the last block -------
    # Valid because the output block index is constant along the 'arbitrary'
    # block axis (writeback is deferred until the batch-tile index changes).
    @pl.when(blk == pl.num_programs(1) - 1)
    def _():
        lnf = lnf_ref[...]
        lf = layernorm(y2, lnf[0:1], lnf[1:2])
        out_ref[...] = lf.reshape(TB, T, H).astype(out_ref.dtype)


# ----------------------------------------------------------------------------
# Wrapper: one pallas_call for the full forward pass
# ----------------------------------------------------------------------------

def shared_transformer_forward(queries, timeline_mask, params,
                               *, num_heads, num_blocks, eps, batch_tile=None):
    # queries: (B, T, H) float32 ; timeline_mask: (B, T) bool (True = padded)
    B, T, H = queries.shape
    if batch_tile is None:
        batch_tile = max(1, B // 2)      # keep >=2 parallel tiles (v7x megacore)
    assert B % batch_tile == 0
    TB, NB = batch_tile, num_blocks
    nbt = B // TB

    keep = (~timeline_mask).astype(queries.dtype)[:, :, None]   # (B, T, 1)

    const3 = lambda b, i: (0, 0, 0)      # weight stacks: constant -> resident
    in_specs = [
        pl.BlockSpec((TB, T, 1), lambda b, i: (b, 0, 0)),        # keep mask
        pl.BlockSpec((TB, T, H), lambda b, i: (b, 0, 0)),        # queries
        pl.BlockSpec((NB, H, 3 * H), const3),                    # Wqkv stack
        pl.BlockSpec((NB, 1, 3 * H), const3),                    # bqkv stack
        pl.BlockSpec((NB, 3 * H, H), const3),                    # [Wo;W1;W2]
        pl.BlockSpec((NB, 8, H), const3),                        # LN g/b + biases
        pl.BlockSpec((2, H), lambda b, i: (0, 0)),               # final LN g/b
    ]
    out_spec = pl.BlockSpec((TB, T, H), lambda b, i: (b, 0, 0))

    kernel = functools.partial(_shared_transformer_kernel,
                               num_heads=num_heads, eps=eps)
    return pl.pallas_call(
        kernel,
        out_shape=jax.ShapeDtypeStruct((B, T, H), queries.dtype),
        grid_spec=pltpu.PrefetchScalarGridSpec(
            num_scalar_prefetch=0,
            grid=(nbt, num_blocks),
            in_specs=in_specs,
            out_specs=out_spec,
            scratch_shapes=[pltpu.VMEM((TB, T, H), jnp.float32)],
        ),
        compiler_params=pltpu.CompilerParams(
            dimension_semantics=("parallel", "arbitrary")),
    )(keep, queries,
      params['wqkv'], params['bqkv'], params['wmisc'], params['vecs'],
      params['lnf'])


# ----------------------------------------------------------------------------
# Pure-JAX reference (f32 math, same bf16-stored weights) for a sanity check
# ----------------------------------------------------------------------------

def reference_forward(queries, timeline_mask, params,
                      *, num_heads, num_blocks, eps):
    keep = (~timeline_mask).astype(queries.dtype)[:, :, None]
    B, T, H = queries.shape
    dh = H // num_heads
    scale = 1.0 / (dh ** 0.5)
    causal = jnp.tril(jnp.ones((T, T), dtype=bool))

    def ln(v, g, b):
        mu = jnp.mean(v, -1, keepdims=True)
        vc = v - mu
        var = jnp.mean(vc * vc, -1, keepdims=True)
        return vc * jax.lax.rsqrt(var + eps) * g + b

    x = queries * keep
    for i in range(num_blocks):
        vecs = params['vecs'][i]
        ln1_g, ln1_b, ln2_g, ln2_b = vecs[0], vecs[1], vecs[2], vecs[3]
        bo, b1, b2 = vecs[4], vecs[5], vecs[6]
        wqkv = params['wqkv'][i].astype(jnp.float32)
        bqkv = params['bqkv'][i]
        wmisc = params['wmisc'][i].astype(jnp.float32)
        wo, w1, w2 = wmisc[:H], wmisc[H:2 * H], wmisc[2 * H:]

        qn = ln(x, ln1_g, ln1_b)
        q = (qn @ wqkv[:, :H] + bqkv[:, :H]) * scale
        k = x @ wqkv[:, H:2 * H] + bqkv[:, H:2 * H]
        v = x @ wqkv[:, 2 * H:] + bqkv[:, 2 * H:]
        qh = q.reshape(B, T, num_heads, dh).transpose(0, 2, 1, 3)
        kh = k.reshape(B, T, num_heads, dh).transpose(0, 2, 1, 3)
        vh = v.reshape(B, T, num_heads, dh).transpose(0, 2, 1, 3)
        s = jnp.einsum('bhqd,bhkd->bhqk', qh, kh)
        s = jnp.where(causal[None, None], s, -1e30)
        p = jax.nn.softmax(s, axis=-1)
        ctx = jnp.einsum('bhqk,bhkd->bhqd', p, vh)
        ctx = ctx.transpose(0, 2, 1, 3).reshape(B, T, H)
        attn_out = ctx @ wo + bo
        x = attn_out + qn
        y = ln(x, ln2_g, ln2_b)
        h1 = jnp.maximum(y @ w1 + b1, 0.0)
        x = (h1 @ w2 + b2 + y) * keep
    lnf = params['lnf']
    return ln(x, lnf[0], lnf[1])


# ----------------------------------------------------------------------------
# Deterministic synthetic parameters, packed into a few per-block slabs
# ----------------------------------------------------------------------------

def init_params(key, num_blocks, hidden):
    H = hidden

    def dense(k, shape, scl=0.05):
        return (scl * jax.random.normal(k, shape)).astype(jnp.float32)

    wqkv, bqkv, wmisc, vecs = [], [], [], []
    for blk in range(num_blocks):
        ks = jax.random.split(jax.random.fold_in(key, blk), 12)
        wq = dense(ks[0], (H, H)); bq = dense(ks[1], (1, H), 0.01)
        wk = dense(ks[2], (H, H)); bk = dense(ks[3], (1, H), 0.01)
        wv = dense(ks[4], (H, H)); bv = dense(ks[5], (1, H), 0.01)
        wo = dense(ks[6], (H, H)); bo = dense(ks[7], (1, H), 0.01)
        w1 = dense(ks[8], (H, H)); b1 = dense(ks[9], (1, H), 0.01)
        w2 = dense(ks[10], (H, H)); b2 = dense(ks[11], (1, H), 0.01)
        wqkv.append(jnp.concatenate([wq, wk, wv], axis=1))      # (H, 3H)
        bqkv.append(jnp.concatenate([bq, bk, bv], axis=1))      # (1, 3H)
        wmisc.append(jnp.concatenate([wo, w1, w2], axis=0))     # (3H, H)
        vecs.append(jnp.concatenate([
            jnp.ones((1, H), jnp.float32),    # ln1 gamma
            jnp.zeros((1, H), jnp.float32),   # ln1 beta
            jnp.ones((1, H), jnp.float32),    # ln2 gamma
            jnp.zeros((1, H), jnp.float32),   # ln2 beta
            bo, b1, b2,
            jnp.zeros((1, H), jnp.float32),   # pad row (sublane alignment)
        ], axis=0))                           # (8, H)
    return {
        'wqkv': jnp.stack(wqkv).astype(jnp.bfloat16),   # MXU operands in bf16
        'bqkv': jnp.stack(bqkv),
        'wmisc': jnp.stack(wmisc).astype(jnp.bfloat16),
        'vecs': jnp.stack(vecs),
        'lnf': jnp.concatenate([jnp.ones((1, H), jnp.float32),
                                jnp.zeros((1, H), jnp.float32)], axis=0),
    }


# ----------------------------------------------------------------------------
# Main
# ----------------------------------------------------------------------------

if __name__ == "__main__":
    B, T, H = 4, 8, 32          # batch, maxlen (seq), hidden_units
    NUM_HEADS = 2
    NUM_BLOCKS = 2
    EPS = 1e-8                  # args.eps
    BATCH_TILE = 2              # 2 sequences per grid step; 2 parallel tiles

    key = jax.random.PRNGKey(0)
    k_x, k_p = jax.random.split(key, 2)

    queries = jax.random.normal(k_x, (B, T, H), dtype=jnp.float32)
    # timeline_mask: True where the position is padding
    timeline_mask = (jnp.zeros((B, T), dtype=bool)
                     .at[1, :2].set(True)
                     .at[3, :3].set(True))

    params = init_params(k_p, NUM_BLOCKS, H)

    log_feats = shared_transformer_forward(
        queries, timeline_mask, params,
        num_heads=NUM_HEADS, num_blocks=NUM_BLOCKS, eps=EPS,
        batch_tile=BATCH_TILE)
    jax.block_until_ready(log_feats)

    ref = reference_forward(
        queries, timeline_mask, params,
        num_heads=NUM_HEADS, num_blocks=NUM_BLOCKS, eps=EPS)
    err = float(jnp.max(jnp.abs(log_feats - ref)))

    assert log_feats.shape == (B, T, H)
    assert err < 5e-2, f"max abs err {err}"
    print("KERNEL_OK")
</pallas_src>

<mosaic_0001>
module attributes {stable_mosaic.version = 11 : i64} {
  func.func @_shared_transformer_kernel(%arg0: i32, %arg1: i32, %arg2: memref<2x8x1xf32, #tpu.memory_space<vmem>>, %arg3: memref<2x8x32xf32, #tpu.memory_space<vmem>>, %arg4: memref<2x32x96xbf16, #tpu.memory_space<vmem>>, %arg5: memref<2x1x96xf32, #tpu.memory_space<vmem>>, %arg6: memref<2x96x32xbf16, #tpu.memory_space<vmem>>, %arg7: memref<2x8x32xf32, #tpu.memory_space<vmem>>, %arg8: memref<2x32xf32, #tpu.memory_space<vmem>>, %arg9: memref<2x8x32xf32, #tpu.memory_space<vmem>>, %arg10: memref<2x8x32xf32, #tpu.memory_space<vmem>>) attributes {dimension_semantics = [#tpu.dimension_semantics<parallel>, #tpu.dimension_semantics<arbitrary>], iteration_bounds = array<i64: 2, 2>, scalar_prefetch = 0 : i64, scratch_operands = 1 : i64, tpu.core_type = #tpu.core_type<tc>, window_params = [{transform_indices = @transform_0, window_bounds = array<i64: 2, 8, 1>}, {transform_indices = @transform_1, window_bounds = array<i64: 2, 8, 32>}, {pipeline_mode = #tpu.pipeline_mode<synchronous>, transform_indices = @transform_2, window_bounds = array<i64: 2, 32, 96>}, {pipeline_mode = #tpu.pipeline_mode<synchronous>, transform_indices = @transform_3, window_bounds = array<i64: 2, 1, 96>}, {pipeline_mode = #tpu.pipeline_mode<synchronous>, transform_indices = @transform_4, window_bounds = array<i64: 2, 96, 32>}, {pipeline_mode = #tpu.pipeline_mode<synchronous>, transform_indices = @transform_5, window_bounds = array<i64: 2, 8, 32>}, {pipeline_mode = #tpu.pipeline_mode<synchronous>, transform_indices = @transform_6, window_bounds = array<i64: 2, 32>}, {transform_indices = @transform_7, window_bounds = array<i64: 2, 8, 32>}]} {
    %c0 = arith.constant 0 : index
    %c0_0 = arith.constant 0 : index
    %c0_1 = arith.constant 0 : index
    %0 = vector.load %arg2[%c0, %c0_0, %c0_1] : memref<2x8x1xf32, #tpu.memory_space<vmem>>, vector<2x8x1xf32>
    %1 = vector.shape_cast %0 : vector<2x8x1xf32> to vector<16x1xf32>
    %c0_i32 = arith.constant 0 : i32
    %2 = arith.cmpi eq, %arg1, %c0_i32 : i32
    %3 = arith.extui %2 : i1 to i32
    %c0_i32_2 = arith.constant 0 : i32
    %4 = arith.cmpi ne, %3, %c0_i32_2 : i32
    scf.if %4 {
      %c0_45 = arith.constant 0 : index
      %c0_46 = arith.constant 0 : index
      %c0_47 = arith.constant 0 : index
      %178 = vector.load %arg3[%c0_45, %c0_46, %c0_47] : memref<2x8x32xf32, #tpu.memory_space<vmem>>, vector<2x8x32xf32>
      %179 = vector.broadcast %0 : vector<2x8x1xf32> to vector<2x8x32xf32>
      %180 = arith.mulf %178, %179 : vector<2x8x32xf32>
      %c0_48 = arith.constant 0 : index
      %c0_49 = arith.constant 0 : index
      %c0_50 = arith.constant 0 : index
      %181 = vector.load %arg10[%c0_48, %c0_49, %c0_50] : memref<2x8x32xf32, #tpu.memory_space<vmem>>, vector<2x8x32xf32>
      tpu.vector_store %arg10[%c0_48, %c0_49, %c0_50], %180 {strides = array<i32>} : memref<2x8x32xf32, #tpu.memory_space<vmem>>, vector<2x8x32xf32>,
    } else {
    }
    %5 = arith.index_cast %arg1 : i32 to index
    %c0_3 = arith.constant 0 : index
    %c0_4 = arith.constant 0 : index
    %6 = vector.load %arg7[%5, %c0_3, %c0_4] : memref<2x8x32xf32, #tpu.memory_space<vmem>>, vector<1x8x32xf32>
    %7 = vector.shape_cast %6 : vector<1x8x32xf32> to vector<8x32xf32>
    %8 = vector.extract_strided_slice %7 {offsets = [0, 0], sizes = [1, 32], strides = [1, 1]} : vector<8x32xf32> to vector<1x32xf32>
    %9 = vector.extract_strided_slice %7 {offsets = [1, 0], sizes = [1, 32], strides = [1, 1]} : vector<8x32xf32> to vector<1x32xf32>
    %10 = vector.extract_strided_slice %7 {offsets = [2, 0], sizes = [1, 32], strides = [1, 1]} : vector<8x32xf32> to vector<1x32xf32>
    %11 = vector.extract_strided_slice %7 {offsets = [3, 0], sizes = [1, 32], strides = [1, 1]} : vector<8x32xf32> to vector<1x32xf32>
    %12 = vector.extract_strided_slice %7 {offsets = [4, 0], sizes = [1, 32], strides = [1, 1]} : vector<8x32xf32> to vector<1x32xf32>
    %13 = vector.extract_strided_slice %7 {offsets = [5, 0], sizes = [1, 32], strides = [1, 1]} : vector<8x32xf32> to vector<1x32xf32>
    %14 = vector.extract_strided_slice %7 {offsets = [6, 0], sizes = [1, 32], strides = [1, 1]} : vector<8x32xf32> to vector<1x32xf32>
    %15 = arith.index_cast %arg1 : i32 to index
    %c0_5 = arith.constant 0 : index
    %c0_6 = arith.constant 0 : index
    %16 = vector.load %arg4[%15, %c0_5, %c0_6] : memref<2x32x96xbf16, #tpu.memory_space<vmem>>, vector<1x32x96xbf16>
    %17 = vector.shape_cast %16 : vector<1x32x96xbf16> to vector<32x96xbf16>
    %18 = arith.index_cast %arg1 : i32 to index
    %c0_7 = arith.constant 0 : index
    %c0_8 = arith.constant 0 : index
    %19 = vector.load %arg5[%18, %c0_7, %c0_8] : memref<2x1x96xf32, #tpu.memory_space<vmem>>, vector<1x1x96xf32>
    %20 = vector.shape_cast %19 : vector<1x1x96xf32> to vector<1x96xf32>
    %21 = arith.index_cast %arg1 : i32 to index
    %c0_9 = arith.constant 0 : index
    %c0_10 = arith.constant 0 : index
    %22 = vector.load %arg6[%21, %c0_9, %c0_10] : memref<2x96x32xbf16, #tpu.memory_space<vmem>>, vector<1x96x32xbf16>
    %23 = vector.shape_cast %22 : vector<1x96x32xbf16> to vector<96x32xbf16>
    %24 = vector.extract_strided_slice %23 {offsets = [0, 0], sizes = [32, 32], strides = [1, 1]} : vector<96x32xbf16> to vector<32x32xbf16>
    %25 = vector.extract_strided_slice %23 {offsets = [32, 0], sizes = [32, 32], strides = [1, 1]} : vector<96x32xbf16> to vector<32x32xbf16>
    %26 = vector.extract_strided_slice %23 {offsets = [64, 0], sizes = [32, 32], strides = [1, 1]} : vector<96x32xbf16> to vector<32x32xbf16>
    %c0_11 = arith.constant 0 : index
    %c0_12 = arith.constant 0 : index
    %c0_13 = arith.constant 0 : index
    %27 = vector.load %arg10[%c0_11, %c0_12, %c0_13] : memref<2x8x32xf32, #tpu.memory_space<vmem>>, vector<2x8x32xf32>
    %28 = vector.shape_cast %27 : vector<2x8x32xf32> to vector<16x32xf32>
    %cst = arith.constant dense<0.000000e+00> : vector<16xf32>
    %29 = vector.multi_reduction <add>, %28, %cst [1] : vector<16x32xf32> to vector<16xf32>
    %30 = vector.shape_cast %29 : vector<16xf32> to vector<16x1xf32>
    %cst_14 = arith.constant 3.200000e+01 : f32
    %31 = vector.broadcast %cst_14 : f32 to vector<16x1xf32>
    %32 = arith.divf %30, %31 : vector<16x1xf32>
    %33 = vector.broadcast %32 : vector<16x1xf32> to vector<16x32xf32>
    %34 = arith.subf %28, %33 : vector<16x32xf32>
    %35 = arith.mulf %34, %34 : vector<16x32xf32>
    %cst_15 = arith.constant dense<0.000000e+00> : vector<16xf32>
    %36 = vector.multi_reduction <add>, %35, %cst_15 [1] : vector<16x32xf32> to vector<16xf32>
    %37 = vector.shape_cast %36 : vector<16xf32> to vector<16x1xf32>
    %cst_16 = arith.constant 3.200000e+01 : f32
    %38 = vector.broadcast %cst_16 : f32 to vector<16x1xf32>
    %39 = arith.divf %37, %38 : vector<16x1xf32>
    %cst_17 = arith.constant 9.99999993E-9 : f32
    %40 = vector.broadcast %cst_17 : f32 to vector<16x1xf32>
    %41 = arith.addf %39, %40 : vector<16x1xf32>
    %42 = math.rsqrt %41 : vector<16x1xf32>
    %43 = vector.broadcast %42 : vector<16x1xf32> to vector<16x32xf32>
    %44 = arith.mulf %34, %43 : vector<16x32xf32>
    %45 = vector.broadcast %8 : vector<1x32xf32> to vector<16x32xf32>
    %46 = arith.mulf %44, %45 : vector<16x32xf32>
    %47 = vector.broadcast %9 : vector<1x32xf32> to vector<16x32xf32>
    %48 = arith.addf %46, %47 : vector<16x32xf32>
    %49 = tpu.concatenate %48, %28 in 0 : vector<16x32xf32>, vector<16x32xf32> -> vector<32x32xf32>
    %50 = arith.truncf %49 : vector<32x32xf32> to vector<32x32xbf16>
    %cst_18 = arith.constant dense<0.000000e+00> : vector<32x96xf32>
    %51 = tpu.matmul %50, %17, %cst_18 {dimension_numbers = #tpu.dot_dimension_numbers<[1], [0], [0], [1], [0, 0, 1, 1], [], []>} : vector<32x32xbf16>, vector<32x96xbf16>, vector<32x96xf32> -> vector<32x96xf32>
    %52 = vector.broadcast %20 : vector<1x96xf32> to vector<32x96xf32>
    %53 = arith.addf %51, %52 : vector<32x96xf32>
    %54 = vector.extract_strided_slice %53 {offsets = [0, 0], sizes = [16, 32], strides = [1, 1]} : vector<32x96xf32> to vector<16x32xf32>
    %cst_19 = arith.constant 2.500000e-01 : f32
    %55 = vector.broadcast %cst_19 : f32 to vector<16x32xf32>
    %56 = arith.mulf %54, %55 : vector<16x32xf32>
    %57 = vector.extract_strided_slice %53 {offsets = [16, 32], sizes = [16, 32], strides = [1, 1]} : vector<32x96xf32> to vector<16x32xf32>
    %58 = vector.extract_strided_slice %53 {offsets = [16, 64], sizes = [16, 32], strides = [1, 1]} : vector<32x96xf32> to vector<16x32xf32>
    %59 = tpu.iota {dimensions = array<i32: 1>} : vector<1x32xi32>
    %c0_i32_20 = arith.constant 0 : i32
    %60 = vector.broadcast %c0_i32_20 : i32 to vector<1x32xi32>
    %61 = arith.cmpi sge, %59, %60 : vector<1x32xi32>
    %c16_i32 = arith.constant 16 : i32
    %62 = vector.broadcast %c16_i32 : i32 to vector<1x32xi32>
    %63 = arith.cmpi slt, %59, %62 : vector<1x32xi32>
    %64 = arith.andi %61, %63 : vector<1x32xi1>
    %65 = arith.extui %64 : vector<1x32xi1> to vector<1x32xi32>
    %66 = arith.sitofp %65 : vector<1x32xi32> to vector<1x32xf32>
    %c16_i32_21 = arith.constant 16 : i32
    %67 = vector.broadcast %c16_i32_21 : i32 to vector<1x32xi32>
    %68 = arith.cmpi sge, %59, %67 : vector<1x32xi32>
    %c32_i32 = arith.constant 32 : i32
    %69 = vector.broadcast %c32_i32 : i32 to vector<1x32xi32>
    %70 = arith.cmpi slt, %59, %69 : vector<1x32xi32>
    %71 = arith.andi %68, %70 : vector<1x32xi1>
    %72 = arith.extui %71 : vector<1x32xi1> to vector<1x32xi32>
    %73 = arith.sitofp %72 : vector<1x32xi32> to vector<1x32xf32>
    %74 = tpu.iota {dimensions = array<i32: 0>} : vector<8x8xi32>
    %75 = tpu.iota {dimensions = array<i32: 1>} : vector<8x8xi32>
    %76 = arith.cmpi sge, %74, %75 : vector<8x8xi32>
    %77 = tpu.concatenate %76, %76 in 0 : vector<8x8xi1>, vector<8x8xi1> -> vector<16x8xi1>
    %78 = vector.extract_strided_slice %56 {offsets = [0, 0], sizes = [8, 32], strides = [1, 1]} : vector<16x32xf32> to vector<8x32xf32>
    %79 = vector.extract_strided_slice %57 {offsets = [0, 0], sizes = [8, 32], strides = [1, 1]} : vector<16x32xf32> to vector<8x32xf32>
    %80 = vector.extract_strided_slice %58 {offsets = [0, 0], sizes = [8, 32], strides = [1, 1]} : vector<16x32xf32> to vector<8x32xf32>
    %81 = vector.broadcast %66 : vector<1x32xf32> to vector<8x32xf32>
    %82 = arith.mulf %78, %81 : vector<8x32xf32>
    %83 = vector.broadcast %73 : vector<1x32xf32> to vector<8x32xf32>
    %84 = arith.mulf %78, %83 : vector<8x32xf32>
    %85 = tpu.concatenate %82, %84 in 0 : vector<8x32xf32>, vector<8x32xf32> -> vector<16x32xf32>
    %cst_22 = arith.constant dense<0.000000e+00> : vector<16x8xf32>
    %86 = tpu.matmul %85, %79, %cst_22 {dimension_numbers = #tpu.dot_dimension_numbers<[1], [1], [0], [0], [0, 0, 1, 0], [], []>, precision = #tpu.contract_precision<fp32>} : vector<16x32xf32>, vector<8x32xf32>, vector<16x8xf32> -> vector<16x8xf32>
    %cst_23 = arith.constant -1.000000e+30 : f32
    %87 = vector.broadcast %cst_23 : f32 to vector<16x8xf32>
    %88 = arith.select %77, %86, %87 : vector<16x8xi1>, vector<16x8xf32>
    %cst_24 = arith.constant dense<0xFF800000> : vector<16xf32>
    %89 = vector.multi_reduction <maximumf>, %88, %cst_24 [1] : vector<16x8xf32> to vector<16xf32>
    %90 = vector.shape_cast %89 : vector<16xf32> to vector<16x1xf32>
    %91 = vector.broadcast %90 : vector<16x1xf32> to vector<16x8xf32>
    %92 = arith.subf %88, %91 : vector<16x8xf32>
    %93 = math.exp %92 : vector<16x8xf32>
    %cst_25 = arith.constant dense<0.000000e+00> : vector<16xf32>
    %94 = vector.multi_reduction <add>, %93, %cst_25 [1] : vector<16x8xf32> to vector<16xf32>
    %95 = vector.shape_cast %94 : vector<16xf32> to vector<16x1xf32>
    %96 = vector.broadcast %95 : vector<16x1xf32> to vector<16x8xf32>
    %97 = arith.divf %93, %96 : vector<16x8xf32>
    %cst_26 = arith.constant dense<0.000000e+00> : vector<16x32xf32>
    %98 = tpu.matmul %97, %80, %cst_26 {dimension_numbers = #tpu.dot_dimension_numbers<[1], [0], [0], [1], [0, 0, 1, 1], [], []>, precision = #tpu.contract_precision<fp32>} : vector<16x8xf32>, vector<8x32xf32>, vector<16x32xf32> -> vector<16x32xf32>
    %99 = vector.extract_strided_slice %98 {offsets = [0, 0], sizes = [8, 32], strides = [1, 1]} : vector<16x32xf32> to vector<8x32xf32>
    %100 = vector.broadcast %66 : vector<1x32xf32> to vector<8x32xf32>
    %101 = arith.mulf %99, %100 : vector<8x32xf32>
    %102 = vector.extract_strided_slice %98 {offsets = [8, 0], sizes = [8, 32], strides = [1, 1]} : vector<16x32xf32> to vector<8x32xf32>
    %103 = vector.broadcast %73 : vector<1x32xf32> to vector<8x32xf32>
    %104 = arith.mulf %102, %103 : vector<8x32xf32>
    %105 = arith.addf %101, %104 : vector<8x32xf32>
    %106 = vector.extract_strided_slice %56 {offsets = [8, 0], sizes = [8, 32], strides = [1, 1]} : vector<16x32xf32> to vector<8x32xf32>
    %107 = vector.extract_strided_slice %57 {offsets = [8, 0], sizes = [8, 32], strides = [1, 1]} : vector<16x32xf32> to vector<8x32xf32>
    %108 = vector.extract_strided_slice %58 {offsets = [8, 0], sizes = [8, 32], strides = [1, 1]} : vector<16x32xf32> to vector<8x32xf32>
    %109 = vector.broadcast %66 : vector<1x32xf32> to vector<8x32xf32>
    %110 = arith.mulf %106, %109 : vector<8x32xf32>
    %111 = vector.broadcast %73 : vector<1x32xf32> to vector<8x32xf32>
    %112 = arith.mulf %106, %111 : vector<8x32xf32>
    %113 = tpu.concatenate %110, %112 in 0 : vector<8x32xf32>, vector<8x32xf32> -> vector<16x32xf32>
    %cst_27 = arith.constant dense<0.000000e+00> : vector<16x8xf32>
    %114 = tpu.matmul %113, %107, %cst_27 {dimension_numbers = #tpu.dot_dimension_numbers<[1], [1], [0], [0], [0, 0, 1, 0], [], []>, precision = #tpu.contract_precision<fp32>} : vector<16x32xf32>, vector<8x32xf32>, vector<16x8xf32> -> vector<16x8xf32>
    %cst_28 = arith.constant -1.000000e+30 : f32
    %115 = vector.broadcast %cst_28 : f32 to vector<16x8xf32>
    %116 = arith.select %77, %114, %115 : vector<16x8xi1>, vector<16x8xf32>
    %cst_29 = arith.constant dense<0xFF800000> : vector<16xf32>
    %117 = vector.multi_reduction <maximumf>, %116, %cst_29 [1] : vector<16x8xf32> to vector<16xf32>
    %118 = vector.shape_cast %117 : vector<16xf32> to vector<16x1xf32>
    %119 = vector.broadcast %118 : vector<16x1xf32> to vector<16x8xf32>
    %120 = arith.subf %116, %119 : vector<16x8xf32>
    %121 = math.exp %120 : vector<16x8xf32>
    %cst_30 = arith.constant dense<0.000000e+00> : vector<16xf32>
    %122 = vector.multi_reduction <add>, %121, %cst_30 [1] : vector<16x8xf32> to vector<16xf32>
    %123 = vector.shape_cast %122 : vector<16xf32> to vector<16x1xf32>
    %124 = vector.broadcast %123 : vector<16x1xf32> to vector<16x8xf32>
    %125 = arith.divf %121, %124 : vector<16x8xf32>
    %cst_31 = arith.constant dense<0.000000e+00> : vector<16x32xf32>
    %126 = tpu.matmul %125, %108, %cst_31 {dimension_numbers = #tpu.dot_dimension_numbers<[1], [0], [0], [1], [0, 0, 1, 1], [], []>, precision = #tpu.contract_precision<fp32>} : vector<16x8xf32>, vector<8x32xf32>, vector<16x32xf32> -> vector<16x32xf32>
    %127 = vector.extract_strided_slice %126 {offsets = [0, 0], sizes = [8, 32], strides = [1, 1]} : vector<16x32xf32> to vector<8x32xf32>
    %128 = vector.broadcast %66 : vector<1x32xf32> to vector<8x32xf32>
    %129 = arith.mulf %127, %128 : vector<8x32xf32>
    %130 = vector.extract_strided_slice %126 {offsets = [8, 0], sizes = [8, 32], strides = [1, 1]} : vector<16x32xf32> to vector<8x32xf32>
    %131 = vector.broadcast %73 : vector<1x32xf32> to vector<8x32xf32>
    %132 = arith.mulf %130, %131 : vector<8x32xf32>
    %133 = arith.addf %129, %132 : vector<8x32xf32>
    %134 = tpu.concatenate %105, %133 in 0 : vector<8x32xf32>, vector<8x32xf32> -> vector<16x32xf32>
    %135 = arith.truncf %134 : vector<16x32xf32> to vector<16x32xbf16>
    %cst_32 = arith.constant dense<0.000000e+00> : vector<16x32xf32>
    %136 = tpu.matmul %135, %24, %cst_32 {dimension_numbers = #tpu.dot_dimension_numbers<[1], [0], [0], [1], [0, 0, 1, 1], [], []>} : vector<16x32xbf16>, vector<32x32xbf16>, vector<16x32xf32> -> vector<16x32xf32>
    %137 = vector.broadcast %12 : vector<1x32xf32> to vector<16x32xf32>
    %138 = arith.addf %136, %137 : vector<16x32xf32>
    %139 = arith.addf %138, %48 : vector<16x32xf32>
    %cst_33 = arith.constant dense<0.000000e+00> : vector<16xf32>
    %140 = vector.multi_reduction <add>, %139, %cst_33 [1] : vector<16x32xf32> to vector<16xf32>
    %141 = vector.shape_cast %140 : vector<16xf32> to vector<16x1xf32>
    %cst_34 = arith.constant 3.200000e+01 : f32
    %142 = vector.broadcast %cst_34 : f32 to vector<16x1xf32>
    %143 = arith.divf %141, %142 : vector<16x1xf32>
    %144 = vector.broadcast %143 : vector<16x1xf32> to vector<16x32xf32>
    %145 = arith.subf %139, %144 : vector<16x32xf32>
    %146 = arith.mulf %145, %145 : vector<16x32xf32>
    %cst_35 = arith.constant dense<0.000000e+00> : vector<16xf32>
    %147 = vector.multi_reduction <add>, %146, %cst_35 [1] : vector<16x32xf32> to vector<16xf32>
    %148 = vector.shape_cast %147 : vector<16xf32> to vector<16x1xf32>
    %cst_36 = arith.constant 3.200000e+01 : f32
    %149 = vector.broadcast %cst_36 : f32 to vector<16x1xf32>
    %150 = arith.divf %148, %149 : vector<16x1xf32>
    %cst_37 = arith.constant 9.99999993E-9 : f32
    %151 = vector.broadcast %cst_37 : f32 to vector<16x1xf32>
    %152 = arith.addf %150, %151 : vector<16x1xf32>
    %153 = math.rsqrt %152 : vector<16x1xf32>
    %154 = vector.broadcast %153 : vector<16x1xf32> to vector<16x32xf32>
    %155 = arith.mulf %145, %154 : vector<16x32xf32>
    %156 = vector.broadcast %10 : vector<1x32xf32> to vector<16x32xf32>
    %157 = arith.mulf %155, %156 : vector<16x32xf32>
    %158 = vector.broadcast %11 : vector<1x32xf32> to vector<16x32xf32>
    %159 = arith.addf %157, %158 : vector<16x32xf32>
    %160 = arith.truncf %159 : vector<16x32xf32> to vector<16x32xbf16>
    %cst_38 = arith.constant dense<0.000000e+00> : vector<16x32xf32>
    %161 = tpu.matmul %160, %25, %cst_38 {dimension_numbers = #tpu.dot_dimension_numbers<[1], [0], [0], [1], [0, 0, 1, 1], [], []>} : vector<16x32xbf16>, vector<32x32xbf16>, vector<16x32xf32> -> vector<16x32xf32>
    %162 = vector.broadcast %13 : vector<1x32xf32> to vector<16x32xf32>
    %163 = arith.addf %161, %162 : vector<16x32xf32>
    %cst_39 = arith.constant 0.000000e+00 : f32
    %164 = vector.broadcast %cst_39 : f32 to vector<16x32xf32>
    %165 = arith.maximumf %163, %164 : vector<16x32xf32>
    %166 = arith.truncf %165 : vector<16x32xf32> to vector<16x32xbf16>
    %cst_40 = arith.constant dense<0.000000e+00> : vector<16x32xf32>
    %167 = tpu.matmul %166, %26, %cst_40 {dimension_numbers = #tpu.dot_dimension_numbers<[1], [0], [0], [1], [0, 0, 1, 1], [], []>} : vector<16x32xbf16>, vector<32x32xbf16>, vector<16x32xf32> -> vector<16x32xf32>
    %168 = vector.broadcast %14 : vector<1x32xf32> to vector<16x32xf32>
    %169 = arith.addf %167, %168 : vector<16x32xf32>
    %170 = arith.addf %169, %159 : vector<16x32xf32>
    %171 = vector.broadcast %1 : vector<16x1xf32> to vector<16x32xf32>
    %172 = arith.mulf %170, %171 : vector<16x32xf32>
    %173 = vector.shape_cast %172 : vector<16x32xf32> to vector<2x8x32xf32>
    %c0_41 = arith.constant 0 : index
    %c0_42 = arith.constant 0 : index
    %c0_43 = arith.constant 0 : index
    %174 = vector.load %arg10[%c0_41, %c0_42, %c0_43] : memref<2x8x32xf32, #tpu.memory_space<vmem>>, vector<2x8x32xf32>
    tpu.vector_store %arg10[%c0_41, %c0_42, %c0_43], %173 {strides = array<i32>} : memref<2x8x32xf32, #tpu.memory_space<vmem>>, vector<2x8x32xf32>,
    %c1_i32 = arith.constant 1 : i32
    %175 = arith.cmpi eq, %arg1, %c1_i32 : i32
    %176 = arith.extui %175 : i1 to i32
    %c0_i32_44 = arith.constant 0 : i32
    %177 = arith.cmpi ne, %176, %c0_i32_44 : i32
    scf.if %177 {
      %c0_45 = arith.constant 0 : index
      %c0_46 = arith.constant 0 : index
      %178 = vector.load %arg8[%c0_45, %c0_46] : memref<2x32xf32, #tpu.memory_space<vmem>>, vector<2x32xf32>
      %179 = vector.extract_strided_slice %178 {offsets = [0, 0], sizes = [1, 32], strides = [1, 1]} : vector<2x32xf32> to vector<1x32xf32>
      %180 = vector.extract_strided_slice %178 {offsets = [1, 0], sizes = [1, 32], strides = [1, 1]} : vector<2x32xf32> to vector<1x32xf32>
      %cst_47 = arith.constant dense<0.000000e+00> : vector<16xf32>
      %181 = vector.multi_reduction <add>, %172, %cst_47 [1] : vector<16x32xf32> to vector<16xf32>
      %182 = vector.shape_cast %181 : vector<16xf32> to vector<16x1xf32>
      %cst_48 = arith.constant 3.200000e+01 : f32
      %183 = vector.broadcast %cst_48 : f32 to vector<16x1xf32>
      %184 = arith.divf %182, %183 : vector<16x1xf32>
      %185 = vector.broadcast %184 : vector<16x1xf32> to vector<16x32xf32>
      %186 = arith.subf %172, %185 : vector<16x32xf32>
      %187 = arith.mulf %186, %186 : vector<16x32xf32>
      %cst_49 = arith.constant dense<0.000000e+00> : vector<16xf32>
      %188 = vector.multi_reduction <add>, %187, %cst_49 [1] : vector<16x32xf32> to vector<16xf32>
      %189 = vector.shape_cast %188 : vector<16xf32> to vector<16x1xf32>
      %cst_50 = arith.constant 3.200000e+01 : f32
      %190 = vector.broadcast %cst_50 : f32 to vector<16x1xf32>
      %191 = arith.divf %189, %190 : vector<16x1xf32>
      %cst_51 = arith.constant 9.99999993E-9 : f32
      %192 = vector.broadcast %cst_51 : f32 to vector<16x1xf32>
      %193 = arith.addf %191, %192 : vector<16x1xf32>
      %194 = math.rsqrt %193 : vector<16x1xf32>
      %195 = vector.broadcast %194 : vector<16x1xf32> to vector<16x32xf32>
      %196 = arith.mulf %186, %195 : vector<16x32xf32>
      %197 = vector.broadcast %179 : vector<1x32xf32> to vector<16x32xf32>
      %198 = arith.mulf %196, %197 : vector<16x32xf32>
      %199 = vector.broadcast %180 : vector<1x32xf32> to vector<16x32xf32>
      %200 = arith.addf %198, %199 : vector<16x32xf32>
      %201 = vector.shape_cast %200 : vector<16x32xf32> to vector<2x8x32xf32>
      %c0_52 = arith.constant 0 : index
      %c0_53 = arith.constant 0 : index
      %c0_54 = arith.constant 0 : index
      %202 = vector.load %arg9[%c0_52, %c0_53, %c0_54] : memref<2x8x32xf32, #tpu.memory_space<vmem>>, vector<2x8x32xf32>
      tpu.vector_store %arg9[%c0_52, %c0_53, %c0_54], %201 {strides = array<i32>} : memref<2x8x32xf32, #tpu.memory_space<vmem>>, vector<2x8x32xf32>,
    } else {
    }
    return
  }
  func.func @transform_0(%arg0: i32, %arg1: i32) -> (i32, i32, i32) {
    %c0_i32 = arith.constant 0 : i32
    %c0_i32_0 = arith.constant 0 : i32
    %c0_i32_1 = arith.constant 0 : i32
    return %arg0, %c0_i32, %c0_i32_0 : i32, i32, i32
  }
  func.func @transform_1(%arg0: i32, %arg1: i32) -> (i32, i32, i32) {
    %c0_i32 = arith.constant 0 : i32
    %c0_i32_0 = arith.constant 0 : i32
    %c0_i32_1 = arith.constant 0 : i32
    return %arg0, %c0_i32, %c0_i32_0 : i32, i32, i32
  }
  func.func @transform_2(%arg0: i32, %arg1: i32) -> (i32, i32, i32) {
    %c0_i32 = arith.constant 0 : i32
    %c0_i32_0 = arith.constant 0 : i32
    %c0_i32_1 = arith.constant 0 : i32
    %c0_i32_2 = arith.constant 0 : i32
    return %c0_i32, %c0_i32_0, %c0_i32_1 : i32, i32, i32
  }
  func.func @transform_3(%arg0: i32, %arg1: i32) -> (i32, i32, i32) {
    %c0_i32 = arith.constant 0 : i32
    %c0_i32_0 = arith.constant 0 : i32
    %c0_i32_1 = arith.constant 0 : i32
    %c0_i32_2 = arith.constant 0 : i32
    return %c0_i32, %c0_i32_0, %c0_i32_1 : i32, i32, i32
  }
  func.func @transform_4(%arg0: i32, %arg1: i32) -> (i32, i32, i32) {
    %c0_i32 = arith.constant 0 : i32
    %c0_i32_0 = arith.constant 0 : i32
    %c0_i32_1 = arith.constant 0 : i32
    %c0_i32_2 = arith.constant 0 : i32
    return %c0_i32, %c0_i32_0, %c0_i32_1 : i32, i32, i32
  }
  func.func @transform_5(%arg0: i32, %arg1: i32) -> (i32, i32, i32) {
    %c0_i32 = arith.constant 0 : i32
    %c0_i32_0 = arith.constant 0 : i32
    %c0_i32_1 = arith.constant 0 : i32
    %c0_i32_2 = arith.constant 0 : i32
    return %c0_i32, %c0_i32_0, %c0_i32_1 : i32, i32, i32
  }
  func.func @transform_6(%arg0: i32, %arg1: i32) -> (i32, i32) {
    %c0_i32 = arith.constant 0 : i32
    %c0_i32_0 = arith.constant 0 : i32
    %c0_i32_1 = arith.constant 0 : i32
    return %c0_i32, %c0_i32_0 : i32, i32
  }
  func.func @transform_7(%arg0: i32, %arg1: i32) -> (i32, i32, i32) {
    %c0_i32 = arith.constant 0 : i32
    %c0_i32_0 = arith.constant 0 : i32
    %c0_i32_1 = arith.constant 0 : i32
    return %arg0, %c0_i32, %c0_i32_0 : i32, i32, i32
  }
}

</mosaic_0001>

<bundles_post_ra>
// kernel: tpu_custom_call.1
= control target key start
LH: loop header
LB: loop body
LE: loop exit
PB: predicated region body
PF: predicated region fallthrough
CT: control target
= control target key end

     0   :  { %12 = vsyncpa [#allocation4], 0  ;;  %s3827_s0 = inlined_call_operand.vmem [shape: f32[4,8,1], index: 0, kind: input, shape index: {}]   ;;  %s3828_s1 = inlined_call_operand.vmem [shape: f32[4,8,32], index: 1, kind: input, shape index: {}]   ;;  %s3829_s2 = inlined_call_operand.vmem [shape: bf16[2,32,96], index: 2, kind: input, shape index: {}]   ;;  %s3830_s3 = inlined_call_operand.vmem [shape: f32[2,1,96], index: 3, kind: input, shape index: {}]   ;;  %s3831_s4 = inlined_call_operand.vmem [shape: bf16[2,96,32], index: 4, kind: input, shape index: {}]   ;;  %s3832_s5 = inlined_call_operand.vmem [shape: f32[2,8,32], index: 5, kind: input, shape index: {}]   ;;  %s3833_s6 = inlined_call_operand.vmem [shape: f32[2,32], index: 6, kind: input, shape index: {}]   ;;  %s3834_s7 = inlined_call_operand.hbm [shape: f32[4,8,32], index: 7, kind: output, shape index: {}]  }
   0x1   :  { %14 = vsyncpa [#allocation4 + $0x1], 0  ;;  %s3526_s24 = smov 0   ;;  %s3528_s25 = smov 0  }
   0x2   :  { %s3530_s26 = smov 0   ;;  %s3532_s27 = smov 0  }
   0x3   :  { %s3534_s28 = smov 0   ;;  %s3536_s29 = smov 0  }
   0x4   :  { %s3538_s30 = smov 0   ;;  %s3540_s8 = smov 0  }
   0x5 LB: > { %s2946_s9 = sadd.s32 4294967295, %s3475_s8   ;;  %s2947_s10 = sadd.s32 4294967294, %s3475_s8   ;;  %s3475_s8 = sphi %s3540_s8, %s20_s8   ;;  %s3471_s30 = sphi %s3538_s30, %s3846_s30   ;;  %s3467_s29 = sphi %s3536_s29, %s3845_s29   ;;  %s3463_s28 = sphi %s3534_s28, %s3844_s28   ;;  %s3459_s27 = sphi %s3532_s27, %s3843_s27   ;;  %s3455_s26 = sphi %s3530_s26, %s3842_s26   ;;  %s3451_s25 = sphi %s3528_s25, %s3841_s25   ;;  %s3447_s24 = sphi %s3526_s24, %s3840_s24  }
   0x6   : > { %s29_s11 = sadd.s32 1, %s3467_s29  ;;  %s32_s12 = sadd.s32 1, %s3471_s30 }
   0x7   : > { %p30_p0 = scmp.ge.s32.totalorder %s29_s11, 2  ;;  %p206_p1 = scmp.ne.s32.totalorder %s3455_s26, %s3451_s25 }
   0x8   : > { %p207_p2 = scmp.eq.s32.totalorder %s2946_s9, 3  ;;  %p212_p4 = scmp.ne.s32.totalorder %s3451_s25, %s3447_s24 }
   0x9   : > { %s3848_s11 = smov (%p30_p0, %s29_s11), 0  ;;  %s3850_s12 = smov (!%p30_p0, %s32_s12), %s3471_s30 }
   0xa   : > { %p3575_p3 = por %p207_p2, %p206_p1  ;;  %p34_p5 = scmp.ge.s32.totalorder %s3850_s12, 2 }
   0xb   : > { %p213_p6 = scmp.eq.s32.totalorder %s2947_s10, 3  ;;  %p2950_p7 = scmp.ge.s32.totalorder %s3475_s8, 1 }
   0xc   : > { %p264_p8 = scmp.lt.s32.totalorder %s3475_s8, 5  ;;  %s3852_s12 = smov (%p34_p5, %s3850_s12), 0 }
   0xd   : > { %3837 = sst [smem:[#allocation6_spill]] %s3852_s12  ;;  %p3585_p9 = por %p213_p6, %p212_p4 }
   0xe   : > { %p265_p10 = pnand %p2950_p7, %p264_p8  ;;  %s193_s15 = ssub.s32 %s3471_s30, %s3852_s12 }
   0xf   : > { %s196_s16 = sadd.s32 1, %s3455_s26  ;;  %p194_p11 = scmp.eq.s32.totalorder %s193_s15, 0 }
  0x10   : > { %268 = sbr.rel (%p265_p10) target bundleno = 3023 (0xbcf), region = 48  ;;  %s298_s18 = sand.u32 (!%p265_p10), 1, %s3451_s25  }
  0x11   : > { %s3593_s17 = scalar_select %p194_p11, %s3455_s26, %s196_s16  }
  0x12   : > { %s2952_s19 = sshll.u32 (!%p265_p10), %s3463_s28, 1  ;;  %s2951_s20 = sshll.u32 (!%p265_p10), %s298_s18, 4 }
  0x13   : > { %p302_p12 = scmp.lt.s32.totalorder (!%p265_p10), %s2952_s19, 3  ;;  %s3609_s16 = scalar_lea.vmem (!%p265_p10), [#allocation3], %s2951_s20 }
  0x14   : > { %p2956_p13 = scmp.ne.s32.totalorder (!%p265_p10), %s3459_s27, 0 }
  0x17   : > { %s3854_s19 = smov (!%p302_p12, %s2952_s19), 3  ;;  %320 = sbr.rel (%p2956_p13) target bundleno = 162 (0xa2), region = 52 }
  0x18   : > { %s2953_s21 = sshll.u32 %s3854_s19, 3  ;;  %v3477_v2 = vmov (!%p2956_p13), 0   ;;  %vm335_vm0 = vcmask (!%p2956_p13), 261120  }
  0x19   : > { %s305_s9 = scalar_lea.vmem %s3827_s0, %s2953_s21  ;;  %s311_s15 = scalar_lea.vmem %s3828_s1, %s2953_s21  ;;  %3342 = vset.pattern.permute.xlu0 (!%p2956_p13), %v3477_v2 }
  0x1a   : > { %v3605_v0 = vld [vmem:[%s305_s9] sm:$0xff]  ;;  %v3607_v1 = vld [vmem:[%s305_s9 + $0x8] sm:$0xff] }
  0x1b   : > { %325 = vperm.xlu0 (!%p2956_p13), %3342, %v3605_v0   ;;  %v321_v3 = vld [vmem:[%s311_s15] sm:$0xff] (!%p2956_p13)  ;;  %v322_v6 = vld [vmem:[%s311_s15 + $0x8] sm:$0xff] (!%p2956_p13) }
  0x1f   : > { %330 = vperm.xlu0 %3342, %v3607_v1  }
  0x9a   : > { %v326_v4 = vpop.permute.xlu0 %325 }
  0x9b   : > { %v333_v5 = vmul.f32 %v326_v4, %v321_v3 }
  0x9d   : > { %336 = vst.msk [vmem:[#allocation2] sm:$0xff] %vm335_vm0, %v333_v5 }
  0x9e   : > { %v331_v7 = vpop.permute.xlu0 %330 }
  0x9f   : > { %v334_v8 = vmul.f32 %v331_v7, %v322_v6 }
  0xa1   : > { %337 = vst.msk [vmem:[#allocation2 + $0x8] sm:$0xff] %vm335_vm0, %v334_v8 }
  0xa2 PF: > { %vm367_vm1 = vcmask 261120   ;;  %s2983_s12 = sshll.u32 %s3459_s27, 4  ;;  %v395_v29 = vlaneseq  ;;  %s2957_s22 = sshll.u32 %s3459_s27, 3  ;;  %v3478_v55 = vmov 0.0   ;;  %vm1003_vm7 = vcmask 64512  }
  0xa3   : > { %s343_s21 = scalar_lea.vmem %s3829_s2, %s2983_s12  ;;  %s339_s10 = scalar_lea.vmem %s3832_s5, %s2957_s22  ;;  %vm3481_vm8 = vmmov 0  }
  0xa4   : > { %v365_v9 = vld [vmem:[#allocation2] sm:$0xff]  ;;  %v3346_v24 = vld [vmem:[%s343_s21 + $0x8] sm:$0xff]   ;;  %v3623_v32 = vshrl.u32 %v395_v29, 7  ;;  %s348_s19 = scalar_lea.vmem %s3830_s3, %s3459_s27  ;;  %v3650_v48 = vand.u32 127, %v395_v29  ;;  %s3479_s20 = smov 96  }
  0xa5   : > { %v368_v11 = vsel %vm367_vm1, %v365_v9, 0.0  ;;  %v3345_v23 = vld [vmem:[%s343_s21] sm:$0xff]   ;;  %s3480_s21 = smov 64   ;;  %s2984_s22 = smul.u32 48, %s3459_s27 }
  0xa6   : > { %369 = vadd.xlane.f32.xlu0 %v368_v11  ;;  %3071 = vmatprep.subr.bf16.mxu0 %v3345_v23  ;;  %v397_v33 = vsub.s32 0, %v3623_v32  ;;  %v3629_v34 = vld [vmem:[%s339_s10] sm:$0xff]  ;;  %v403_v38 = vsub.s32 1, %v3623_v32  ;;  %vm487_vm2 = vcmp.lt.s32.totalorder %v3650_v48, 16  ;;  %vm491_vm3 = vcmp.ge.s32.totalorder %v3650_v48, 16  ;;  %p2977_p0 = scmp.ne.s32.totalorder %s3459_s27, 1 }
  0xa7   : > { %3072 = vmatpush3.bf16.msra.mxu0 %v3345_v23  ;;  %v2961_v49 = vld [vmem:[%s348_s19] ss:$0 sm:$0xff]  ;;  %v3656_v56 = vsel %vm487_vm2, 1.0, %v3478_v55  ;;  %vm492_vm4 = vcmp.lt.s32.totalorder %v3650_v48, 32  ;;  %vm498_vm6 = vcmp.ge.s32.totalorder %v3623_v32, %v3650_v48  ;;  %s3703_s10 = scalar_lea.vmem %s3831_s4, %s2984_s22 }
  0xa8   : > { %v366_v10 = vld [vmem:[#allocation2 + $0x8] sm:$0xff]  ;;  %3073 = vmatprep.subr.bf16.mxu0 %v3346_v24  ;;  %v398_v37 = vrot.slane %v3629_v34, %v397_v33  ;;  %v404_v42 = vrot.slane %v3629_v34, %v403_v38  ;;  %vm493_vm5 = vmand %vm491_vm3, %vm492_vm4 }
  0xa9   : > { %v371_v12 = vsel %vm367_vm1, %v366_v10, 0.0  ;;  %v408_v46 = vpack.c.bf16 %v366_v10, %v365_v9  ;;  %v3667_v6 = vsel %vm493_vm5, 1.0, %v3478_v55 }
  0xaa   : > { %372 = vadd.xlane.f32.xlu0 %v371_v12 }
  0xab   : > { %3074 = vmatpush3.bf16.msra.mxu0 %v3346_v24 }
 0x133   : > { %v370_v13 = vpop.xlane.xlu0 %369 }
 0x134   : > { %v375_v14 = vmul.f32 0.03125, %v370_v13 }
 0x136   : > { %v377_v15 = vsub.f32 %v365_v9, %v375_v14 }
 0x137   : > { %v373_v16 = vpop.xlane.xlu0 %372 }
 0x138   : > { %v376_v17 = vmul.f32 0.03125, %v373_v16  ;;  %v379_v18 = vmul.f32 %v377_v15, %v377_v15 }
 0x13a   : > { %v378_v19 = vsub.f32 %v366_v10, %v376_v17  ;;  %v381_v20 = vsel %vm367_vm1, %v379_v18, 0.0 }
 0x13b   : > { %382 = vadd.xlane.f32.xlu1 %v381_v20 }
 0x13c   : > { %v380_v21 = vmul.f32 %v378_v19, %v378_v19 }
 0x13e   : > { %v384_v22 = vsel %vm367_vm1, %v380_v21, 0.0 }
 0x13f   : > { %385 = vadd.xlane.f32.xlu1 %v384_v22 }
 0x1c8   : > { %v383_v25 = vpop.xlane.xlu1 %382 }
 0x1c9   : > { %v387_v26 = vmul.f32 0.03125, %v383_v25 }
 0x1cb   : > { %v389_v27 = vadd.f32 1e-08, %v387_v26 }
 0x1cc   : > { %v386_v28 = vpop.xlane.xlu1 %385 }
 0x1cd   : > { %3353 = vrsqrt.f32 %v389_v27  ;;  %v388_v30 = vmul.f32 0.03125, %v386_v28 }
 0x1cf   : > { %v390_v31 = vadd.f32 1e-08, %v388_v30 }
 0x1d1   : > { %3355 = vrsqrt.f32 %v390_v31 }
 0x1d7   : > { %v3354_v35 = vpop.eup %3353 }
 0x1d8   : > { %v393_v36 = vmul.f32 %v3354_v35, %v377_v15 }
 0x1da   : > { %v399_v41 = vmul.f32 %v398_v37, %v393_v36 }
 0x1db   : > { %v3356_v39 = vpop.eup %3355 }
 0x1dc   : > { %v394_v40 = vmul.f32 %v3356_v39, %v378_v19  ;;  %v3638_v44 = vadd.f32 %v404_v42, %v399_v41 }
 0x1de   : > { %v400_v43 = vmul.f32 %v398_v37, %v394_v40 }
 0x1e0   : > { %v3640_v45 = vadd.f32 %v404_v42, %v400_v43 }
 0x1e2   : > { %v407_v47 = vpack.c.bf16 %v3640_v45, %v3638_v44 }
 0x1e4   : > { %3075 = vmatprep.mubr.msk.bf16.mxu0 %vm367_vm1, %v407_v47 }
 0x1e5   : > { %3076 = vmatmul.mubr.msk.bf16.vlgmr.msra.gmra.mrb[0].mxu0 %vm367_vm1, %v408_v46 }
 0x2b8   : > { %v3077_v50 = vpop.f32.mrb[0].mxu0 }
 0x2b9   : > { %v3653_v51 = vadd.f32 %v3077_v50, %v2961_v49  ;;  %v467_v52 = vpop.f32.mrb[1].mxu0 }
 0x2ba   : > { %v468_v53 = vadd.f32 %v2961_v49, %v467_v52  ;;  %v3078_v54 = vpop.f32.mrb[2].mxu0 }
 0x2bb   : > { %v3658_v57 = vadd.f32 %v3078_v54, %v2961_v49  ;;  %502 = vrot.lane.b32.xlu0 %v3653_v51, %s3479_s20  ;;  %v470_v58 = vpop.f32.mrb[3].mxu0 }
 0x2bc   : > { %v482_v59 = vmul.f32 0.25, %v468_v53  ;;  %v471_v60 = vadd.f32 %v2961_v49, %v470_v58 }
 0x2bd   : > { %1530 = vrot.lane.b32.xlu1 %v3658_v57, %s3479_s20 }
 0x2be   : > { %v499_v61 = vmul.f32 %v3656_v56, %v482_v59  ;;  %v500_v7 = vmul.f32 %v3667_v6, %v482_v59  ;;  %v483_v21 = vmul.f32 0.25, %v471_v60 }
 0x2c0   : > { %v505_v62 = vsel %vm367_vm1, %v499_v61, 0  ;;  %v508_v8 = vsel %vm367_vm1, %v500_v7, 0  ;;  %v1527_v22 = vmul.f32 %v3656_v56, %v483_v21  ;;  %v1528_v24 = vmul.f32 %v3667_v6, %v483_v21 }
 0x2c1   : > { %v578_v63 = vand.u32 4294901760, %v505_v62  ;;  %v588_v9 = vand.u32 4294901760, %v508_v8 }
 0x2c2   : > { %v1533_v25 = vsel %vm367_vm1, %v1527_v22, 0  ;;  %v1536_v27 = vsel %vm367_vm1, %v1528_v24, 0 }
 0x2c3   : > { %v579_v2 = vsub.f32 %v505_v62, %v578_v63  ;;  %v589_v10 = vsub.f32 %v508_v8, %v588_v9  ;;  %v1606_v28 = vand.u32 4294901760, %v1533_v25  ;;  %v1616_v30 = vand.u32 4294901760, %v1536_v27 }
 0x2c5   : > { %v580_v3 = vand.u32 4294901760, %v579_v2  ;;  %v590_v11 = vand.u32 4294901760, %v589_v10  ;;  %v1607_v31 = vsub.f32 %v1533_v25, %v1606_v28  ;;  %v1617_v36 = vsub.f32 %v1536_v27, %v1616_v30 }
 0x2c7   : > { %v581_v4 = vsub.f32 %v579_v2, %v580_v3  ;;  %v591_v15 = vsub.f32 %v589_v10, %v590_v11  ;;  %v1608_v37 = vand.u32 4294901760, %v1607_v31  ;;  %v1618_v40 = vand.u32 4294901760, %v1617_v36 }
 0x2c9   : > { %v582_v5 = vand.u32 4294901760, %v581_v4  ;;  %v592_v17 = vand.u32 4294901760, %v591_v15  ;;  %v1609_v41 = vsub.f32 %v1607_v31, %v1608_v37  ;;  %v1619_v43 = vsub.f32 %v1617_v36, %v1618_v40 }
 0x2cb   : > { %3081 = vmatprep.mubr.f32.mxu1 %v582_v5  ;;  %v1610_v46 = vand.u32 4294901760, %v1609_v41  ;;  %v1620_v49 = vand.u32 4294901760, %v1619_v43 }
 0x32d   : > { %v503_v12 = vpop.permute.xlu0 %502 }
 0x32e   : > { %v510_v13 = vsel %vm367_vm1, %v503_v12, 0 }
 0x32f   : > { %v513_v14 = vand.u32 4294901760, %v510_v13  ;;  %v1531_v23 = vpop.permute.xlu1 %1530 }
 0x330   : > { %v1538_v26 = vsel %vm367_vm1, %v1531_v23, 0 }
 0x331   : > { %v600_v16 = vsub.f32 %v510_v13, %v513_v14  ;;  %3079 = vmatprep.subr.mxu1 %v513_v14  ;;  %v1541_v29 = vand.u32 4294901760, %v1538_v26 }
 0x332   : > { %3080 = vmatpush3.xpose.msra.mxu1 %v513_v14 }
 0x333   : > { %v601_v18 = vand.u32 4294901760, %v600_v16  ;;  %v1628_v35 = vsub.f32 %v1538_v26, %v1541_v29 }
 0x335   : > { %3082 = vmatmul.mubr.f32.vlgmr.msra.gmra.mrb[0].mxu1 %v592_v17  ;;  %v602_v19 = vsub.f32 %v600_v16, %v601_v18  ;;  %v1629_v39 = vand.u32 4294901760, %v1628_v35 }
 0x336   : > { %3086 = vmatprep.mubr.f32.mxu1 %v578_v63 }
 0x337   : > { %v603_v20 = vand.u32 4294901760, %v602_v19  ;;  %v1630_v42 = vsub.f32 %v1628_v35, %v1629_v39 }
 0x339   : > { %3084 = vmatprep.subr.mxu1 %v603_v20  ;;  %v1631_v47 = vand.u32 4294901760, %v1630_v42 }
 0x33a   : > { %3085 = vmatpush3.xpose.msra.mxu1 %v603_v20 }
 0x33b   : > { %3089 = vmatprep.subr.mxu1 %v600_v16 }
 0x33d   : > { %3087 = vmatmul.mubr.f32.vlgmr.msra.gmra.mrb[0].mxu1 %v588_v9 }
 0x33e   : > { %3090 = vmatpush3.xpose.msra.mxu1 %v600_v16  ;;  %3091 = vmatprep.mubr.f32.mxu1 %v579_v2 }
 0x33f   : > { %3094 = vmatprep.subr.mxu1 %v513_v14 }
 0x345   : > { %3092 = vmatmul.mubr.f32.vlgmr.msra.gmra.mrb[0].mxu1 %v589_v10 }
 0x346   : > { %3095 = vmatpush3.xpose.msra.mxu1 %v513_v14  ;;  %3096 = vmatprep.mubr.f32.mxu1 %v580_v3 }
 0x347   : > { %3099 = vmatprep.subr.mxu1 %v601_v18 }
 0x34d   : > { %3097 = vmatmul.mubr.f32.vlgmr.msra.gmra.mrb[0].mxu1 %v590_v11 }
 0x34e   : > { %3100 = vmatpush3.xpose.msra.mxu1 %v601_v18  ;;  %3101 = vmatprep.mubr.f32.mxu1 %v578_v63 }
 0x34f   : > { %3104 = vmatprep.subr.mxu1 %v513_v14 }
 0x355   : > { %3102 = vmatmul.mubr.f32.vlgmr.msra.gmra.mrb[0].mxu1 %v588_v9 }
 0x356   : > { %3105 = vmatpush3.xpose.msra.mxu1 %v513_v14  ;;  %3106 = vmatprep.mubr.f32.mxu1 %v578_v63 }
 0x357   : > { %3139 = vmatprep.subr.mxu1 %v1541_v29 }
 0x35d   : > { %3107 = vmatmul.mubr.f32.vlgmr.msra.gmra.mrb[0].mxu1 %v588_v9 }
 0x35e   : > { %3140 = vmatpush3.xpose.msra.mxu1 %v1541_v29  ;;  %3141 = vmatprep.mubr.f32.mxu1 %v1610_v46 }
 0x35f   : > { %3144 = vmatprep.subr.mxu1 %v1631_v47 }
 0x361   : > { %3142 = vmatmul.mubr.f32.vlgmr.msra.gmra.mrb[2].mxu1 %v1620_v49 }
 0x362   : > { %3145 = vmatpush3.xpose.msra.mxu1 %v1631_v47  ;;  %3146 = vmatprep.mubr.f32.mxu1 %v1606_v28 }
 0x363   : > { %3149 = vmatprep.subr.mxu1 %v1628_v35 }
 0x369   : > { %3147 = vmatmul.mubr.f32.vlgmr.msra.gmra.mrb[2].mxu1 %v1616_v30 }
 0x36a   : > { %3150 = vmatpush3.xpose.msra.mxu1 %v1628_v35  ;;  %3151 = vmatprep.mubr.f32.mxu1 %v1607_v31 }
 0x36b   : > { %3154 = vmatprep.subr.mxu1 %v1541_v29 }
 0x371   : > { %3152 = vmatmul.mubr.f32.vlgmr.msra.gmra.mrb[2].mxu1 %v1617_v36 }
 0x372   : > { %3155 = vmatpush3.xpose.msra.mxu1 %v1541_v29  ;;  %3156 = vmatprep.mubr.f32.mxu1 %v1608_v37 }
 0x373   : > { %3159 = vmatprep.subr.mxu1 %v1629_v39 }
 0x379   : > { %3157 = vmatmul.mubr.f32.vlgmr.msra.gmra.mrb[2].mxu1 %v1618_v40 }
 0x37a   : > { %3160 = vmatpush3.xpose.msra.mxu1 %v1629_v39  ;;  %3161 = vmatprep.mubr.f32.mxu1 %v1606_v28 }
 0x37b   : > { %3164 = vmatprep.subr.mxu1 %v1541_v29 }
 0x381   : > { %3162 = vmatmul.mubr.f32.vlgmr.msra.gmra.mrb[2].mxu1 %v1616_v30 }
 0x382   : > { %3165 = vmatpush3.xpose.msra.mxu1 %v1541_v29  ;;  %3166 = vmatprep.mubr.f32.mxu1 %v1606_v28 }
 0x383   : > { %3199 = vmatprep.subr.bf16.mxu1 %v3478_v55 }
 0x389   : > { %3167 = vmatmul.mubr.f32.vlgmr.msra.gmra.mrb[2].mxu1 %v1616_v30 }
 0x38a   : > { %3203 = vmatprep.mubr.msk.bf16.mxu1 %vm3481_vm8, %v3478_v55 }
 0x430   : > { %v3108_v50 = vpop.f32.mrb[0].mxu1 }
 0x431   : > { %v1002_v52 = vsel %vm498_vm6, %v3108_v50, -1e+30  ;;  %v991_v53 = vpop.f32.mrb[1].mxu1 }
 0x432   : > { %v1001_v54 = vsel %vm498_vm6, %v991_v53, -1e+30  ;;  %v1007_v58 = vsel %vm1003_vm7, %v1002_v52, -inf }
 0x433   : > { %1008 = vmax.xlane.f32.xlu0 %v1007_v58  ;;  %v1004_v59 = vsel %vm1003_vm7, %v1001_v54, -inf }
 0x434   : > { %1005 = vmax.xlane.f32.xlu1 %v1004_v59 }
 0x45c   : > { %v3168_v60 = vpop.f32.mrb[2].mxu1 }
 0x45d   : > { %v2030_v61 = vsel %vm498_vm6, %v3168_v60, -1e+30  ;;  %v2019_v62 = vpop.f32.mrb[3].mxu1 }
 0x45e   : > { %v2029_v63 = vsel %vm498_vm6, %v2019_v62, -1e+30  ;;  %v2034_v2 = vsel %vm1003_vm7, %v2030_v61, -inf }
 0x45f   : > { %2035 = vmax.xlane.f32.xlu1 %v2034_v2  ;;  %v2031_v48 = vsel %vm1003_vm7, %v2029_v63, -inf }
 0x460   : > { %2032 = vmax.xlane.f32.xlu0 %v2031_v48 }
 0x4c0   : > { %v1009_v3 = vpop.xlane.xlu0 %1008 }
 0x4c1   : > { %v1011_v4 = vsub.f32 %v1002_v52, %v1009_v3  ;;  %v1006_v5 = vpop.xlane.xlu1 %1005 }
 0x4c2   : > { %v1010_v7 = vsub.f32 %v1001_v54, %v1006_v5 }
 0x4c3   : > { %v1014_v8 = vmul.f32 1.442695, %v1011_v4 }
 0x4c4   : > { %v1012_v9 = vmul.f32 1.442695, %v1010_v7 }
 0x4c5   : > { %3357 = vpow2.f32 %v1014_v8 }
 0x4c6   : > { %3359 = vpow2.f32 %v1012_v9 }
 0x4cf   : > { %v3358_v10 = vpop.eup %3357 }
 0x4d0   : > { %v3360_v11 = vpop.eup %3359  ;;  %v1019_v12 = vsel %vm1003_vm7, %v3358_v10, 0.0 }
 0x4d1   : > { %1020 = vadd.xlane.f32.xlu1 %v1019_v12  ;;  %v1016_v13 = vsel %vm1003_vm7, %v3360_v11, 0.0 }
 0x4d2   : > { %1017 = vadd.xlane.f32.xlu0 %v1016_v13 }
 0x4e8   : > { %1026 = vrot.lane.b32.xlu0 %v3653_v51, %s3480_s21 }
 0x4ec   : > { %v2036_v14 = vpop.xlane.xlu1 %2035 }
 0x4ed   : > { %v2038_v15 = vsub.f32 %v2030_v61, %v2036_v14  ;;  %v2033_v16 = vpop.xlane.xlu0 %2032 }
 0x4ee   : > { %v2037_v17 = vsub.f32 %v2029_v63, %v2033_v16 }
 0x4ef   : > { %v2041_v18 = vmul.f32 1.442695, %v2038_v15 }
 0x4f0   : > { %v2039_v19 = vmul.f32 1.442695, %v2037_v17 }
 0x4f1   : > { %3361 = vpow2.f32 %v2041_v18 }
 0x4f2   : > { %3363 = vpow2.f32 %v2039_v19  ;;  %v3347_v19 = vld [vmem:[%s3703_s10] sm:$0xff]  }
 0x4f3   : > { %3200 = vmatpush3.bf16.msra.mxu1 %v3347_v19  ;;  %v3352_v19 = vld [vmem:[%s3703_s10 + $0x28] sm:$0xff]  }
 0x4f4   : > { %3201 = vmatprep.subr.bf16.mxu1 %v3478_v55 }
 0x4fb   : > { %v3362_v20 = vpop.eup %3361 }
 0x4fc   : > { %v2046_v21 = vsel %vm1003_vm7, %v3362_v20, 0.0  ;;  %v3688_v22 = vpop.eup %3363 }
 0x4fd   : > { %2047 = vadd.xlane.f32.xlu1 %v2046_v21  ;;  %v2043_v23 = vsel %vm1003_vm7, %v3688_v22, 0.0 }
 0x501   : > { %2044 = vadd.xlane.f32.xlu1 %v2043_v23 }
 0x512   : > { %2053 = vrot.lane.b32.xlu1 %v3658_v57, %s3480_s21 }
 0x55e   : > { %v1021_v51 = vpop.xlane.xlu1 %1020 }
 0x55f   : > { %3365 = vrcp.f32 %v1021_v51  ;;  %v1018_v24 = vpop.xlane.xlu0 %1017 }
 0x560   : > { %3367 = vrcp.f32 %v1018_v24 }
 0x563   : > { %v1027_v25 = vpop.permute.xlu0 %1026 }
 0x564   : > { %v1036_v26 = vand.u32 4294901760, %v1027_v25 }
 0x566   : > { %v1123_v27 = vsub.f32 %v1027_v25, %v1036_v26  ;;  %3109 = vmatprep.subr.mxu0 %v1036_v26 }
 0x567   : > { %3110 = vmatpush3.msra.mxu0 %v1036_v26 }
 0x568   : > { %v1124_v28 = vand.u32 4294901760, %v1123_v27 }
 0x569   : > { %v3366_v29 = vpop.eup %3365 }
 0x56a   : > { %v3368_v30 = vpop.eup %3367  ;;  %v1025_v31 = vmul.f32 %v3366_v29, %v3358_v10  ;;  %v1125_v35 = vsub.f32 %v1123_v27, %v1124_v28 }
 0x56b   : > { %v1023_v36 = vmul.f32 %v3368_v30, %v3360_v11 }
 0x56c   : > { %v1126_v37 = vand.u32 4294901760, %v1125_v35  ;;  %v1033_v39 = vsel %vm1003_vm7, %v1025_v31, 0  ;;  %v2557_v31 = vsub.s32 4, %v3623_v32 }
 0x56d   : > { %v1030_v57 = vsel %vm1003_vm7, %v1023_v36, 0  ;;  %v1111_v40 = vand.u32 4294901760, %v1033_v39 }
 0x56e   : > { %3114 = vmatprep.subr.mxu0 %v1126_v37  ;;  %v1101_v41 = vand.u32 4294901760, %v1030_v57  ;;  %v2558_v35 = vrot.slane %v3629_v34, %v2557_v31 }
 0x56f   : > { %v1112_v42 = vsub.f32 %v1033_v39, %v1111_v40 }
 0x570   : > { %v1102_v43 = vsub.f32 %v1030_v57, %v1101_v41 }
 0x571   : > { %v1113_v46 = vand.u32 4294901760, %v1112_v42 }
 0x572   : > { %v1103_v47 = vand.u32 4294901760, %v1102_v43 }
 0x573   : > { %v1114_v49 = vsub.f32 %v1112_v42, %v1113_v46 }
 0x574   : > { %v1104_v50 = vsub.f32 %v1102_v43, %v1103_v47 }
 0x575   : > { %v1115_v53 = vand.u32 4294901760, %v1114_v49 }
 0x576   : > { %v1105_v52 = vand.u32 4294901760, %v1104_v50 }
 0x578   : > { %3111 = vmatprep.mubr.f32.mxu0 %v1105_v52 }
 0x579   : > { %3112 = vmatmul.mubr.f32.vlgmr.msra.gmra.mrb[4].mxu0 %v1115_v53 }
 0x57a   : > { %3115 = vmatpush3.msra.mxu0 %v1126_v37  ;;  %3116 = vmatprep.mubr.f32.mxu0 %v1101_v41 }
 0x57b   : > { %3119 = vmatprep.subr.mxu0 %v1123_v27 }
 0x581   : > { %3117 = vmatmul.mubr.f32.vlgmr.msra.gmra.mrb[4].mxu0 %v1111_v40 }
 0x582   : > { %3120 = vmatpush3.msra.mxu0 %v1123_v27  ;;  %3121 = vmatprep.mubr.f32.mxu0 %v1102_v43 }
 0x583   : > { %3124 = vmatprep.subr.mxu0 %v1036_v26 }
 0x589   : > { %3122 = vmatmul.mubr.f32.vlgmr.msra.gmra.mrb[4].mxu0 %v1112_v42 }
 0x58a   : > { %3125 = vmatpush3.msra.mxu0 %v1036_v26  ;;  %3126 = vmatprep.mubr.f32.mxu0 %v1103_v47  ;;  %v2048_v54 = vpop.xlane.xlu1 %2047 }
 0x58b   : > { %3129 = vmatprep.subr.mxu0 %v1124_v28  ;;  %3369 = vrcp.f32 %v2048_v54 }
 0x58e   : > { %v2045_v58 = vpop.xlane.xlu1 %2044 }
 0x58f   : > { %3371 = vrcp.f32 %v2045_v58 }
 0x591   : > { %3127 = vmatmul.mubr.f32.vlgmr.msra.gmra.mrb[4].mxu0 %v1113_v46 }
 0x592   : > { %3130 = vmatpush3.msra.mxu0 %v1124_v28  ;;  %3131 = vmatprep.mubr.f32.mxu0 %v1101_v41  ;;  %v2054_v59 = vpop.permute.xlu1 %2053 }
 0x593   : > { %3134 = vmatprep.subr.mxu0 %v1036_v26  ;;  %v2063_v60 = vand.u32 4294901760, %v2054_v59 }
 0x595   : > { %v3370_v61 = vpop.eup %3369  ;;  %v2150_v62 = vsub.f32 %v2054_v59, %v2063_v60 }
 0x596   : > { %v2052_v63 = vmul.f32 %v3370_v61, %v3362_v20  ;;  %v3348_v20 = vld [vmem:[%s3703_s10 + $0x8] sm:$0xff]  }
 0x597   : > { %v2151_v3 = vand.u32 4294901760, %v2150_v62  ;;  %3202 = vmatpush3.bf16.msra.mxu1 %v3348_v20  ;;  %v3482_v20 = vmov 0  }
 0x598   : > { %v2060_v2 = vsel %vm1003_vm7, %v2052_v63, 0  ;;  %3207 = vmatprep.subr.bf16.mxu1 %v3478_v55  ;;  %3343 = vset.pattern.permute.xlu0 %v3482_v20 }
 0x599   : > { %v3372_v48 = vpop.eup %3371  ;;  %3132 = vmatmul.mubr.f32.vlgmr.msra.gmra.mrb[4].mxu0 %v1111_v40  ;;  %v2138_v4 = vand.u32 4294901760, %v2060_v2  ;;  %v2152_v9 = vsub.f32 %v2150_v62, %v2151_v3  ;;  %3344 = vset.pattern.permute.xlu1 %v3482_v20 }
 0x59a   : > { %v2050_v5 = vmul.f32 %v3372_v48, %v3688_v22  ;;  %3135 = vmatpush3.msra.mxu0 %v1036_v26  ;;  %3136 = vmatprep.mubr.f32.mxu0 %v1101_v41 }
 0x59b   : > { %3169 = vmatprep.subr.mxu0 %v2063_v60  ;;  %v2139_v7 = vsub.f32 %v2060_v2, %v2138_v4  ;;  %v2153_v13 = vand.u32 4294901760, %v2152_v9  ;;  %v2651_v9 = vsub.s32 3, %v3623_v32 }
 0x59c   : > { %v2057_v8 = vsel %vm1003_vm7, %v2050_v5, 0 }
 0x59d   : > { %v2128_v10 = vand.u32 4294901760, %v2057_v8  ;;  %v2140_v11 = vand.u32 4294901760, %v2139_v7 }
 0x59f   : > { %v2129_v12 = vsub.f32 %v2057_v8, %v2128_v10  ;;  %v2141_v15 = vsub.f32 %v2139_v7, %v2140_v11 }
 0x5a1   : > { %3137 = vmatmul.mubr.f32.vlgmr.msra.gmra.mrb[4].mxu0 %v1111_v40  ;;  %v2130_v14 = vand.u32 4294901760, %v2129_v12  ;;  %v2142_v18 = vand.u32 4294901760, %v2141_v15 }
 0x5a2   : > { %3170 = vmatpush3.msra.mxu0 %v2063_v60 }
 0x5a3   : > { %3174 = vmatprep.subr.mxu0 %v2153_v13  ;;  %v2131_v16 = vsub.f32 %v2129_v12, %v2130_v14 }
 0x5a5   : > { %v2132_v17 = vand.u32 4294901760, %v2131_v16 }
 0x5a7   : > { %3171 = vmatprep.mubr.f32.mxu0 %v2132_v17 }
 0x5a8   : > { %3172 = vmatmul.mubr.f32.vlgmr.msra.gmra.mrb[6].mxu0 %v2142_v18  ;;  %v3351_v18 = vld [vmem:[%s3703_s10 + $0x20] sm:$0xff]  }
 0x5a9   : > { %3175 = vmatpush3.msra.mxu0 %v2153_v13  ;;  %3176 = vmatprep.mubr.f32.mxu0 %v2128_v10  ;;  %v2652_v13 = vrot.slane %v3629_v34, %v2651_v9 }
 0x5aa   : > { %3179 = vmatprep.subr.mxu0 %v2150_v62 }
 0x5b0   : > { %3177 = vmatmul.mubr.f32.vlgmr.msra.gmra.mrb[6].mxu0 %v2138_v4 }
 0x5b1   : > { %3180 = vmatpush3.msra.mxu0 %v2150_v62  ;;  %3181 = vmatprep.mubr.f32.mxu0 %v2129_v12 }
 0x5b2   : > { %3184 = vmatprep.subr.mxu0 %v2063_v60 }
 0x5b8   : > { %3182 = vmatmul.mubr.f32.vlgmr.msra.gmra.mrb[6].mxu0 %v2139_v7 }
 0x5b9   : > { %3185 = vmatpush3.msra.mxu0 %v2063_v60  ;;  %3186 = vmatprep.mubr.f32.mxu0 %v2130_v14 }
 0x5ba   : > { %3189 = vmatprep.subr.mxu0 %v2151_v3 }
 0x5c0   : > { %3187 = vmatmul.mubr.f32.vlgmr.msra.gmra.mrb[6].mxu0 %v2140_v11 }
 0x5c1   : > { %3190 = vmatpush3.msra.mxu0 %v2151_v3  ;;  %3191 = vmatprep.mubr.f32.mxu0 %v2128_v10 }
 0x5c2   : > { %3194 = vmatprep.subr.mxu0 %v2063_v60 }
 0x5c8   : > { %3192 = vmatmul.mubr.f32.vlgmr.msra.gmra.mrb[6].mxu0 %v2138_v4 }
 0x5c9   : > { %3195 = vmatpush3.msra.mxu0 %v2063_v60  ;;  %3196 = vmatprep.mubr.f32.mxu0 %v2128_v10  ;;  %v3350_v60 = vld [vmem:[%s3703_s10 + $0x18] sm:$0xff]  }
 0x5ca   : > { %3215 = vmatprep.subr.bf16.mxu0 %v3478_v55 }
 0x5d0   : > { %3197 = vmatmul.mubr.f32.vlgmr.msra.gmra.mrb[6].mxu0 %v2138_v4  ;;  %v2645_v4 = vsub.s32 2, %v3623_v32 }
 0x5d1   : > { %3219 = vmatprep.mubr.msk.bf16.mxu0 %vm3481_vm8, %v3478_v55  ;;  %3216 = vmatpush3.bf16.msra.mxu0 %v3351_v18 }
 0x5d2   : > { %v2646_v7 = vrot.slane %v3629_v34, %v2645_v4  ;;  %3217 = vmatprep.subr.bf16.mxu0 %v3478_v55 }
 0x5d5   : > { %3218 = vmatpush3.bf16.msra.mxu0 %v3352_v19 }
 0x674   : > { %v3138_v21 = vpop.f32.mrb[4].mxu0 }
 0x675   : > { %v1525_v22 = vmul.f32 %v3138_v21, %v3667_v6  ;;  %v1514_v23 = vpop.f32.mrb[5].mxu0  ;;  %v2658_v21 = vsub.s32 5, %v3623_v32 }
 0x676   : > { %v1524_v51 = vmul.f32 %v3656_v56, %v1514_v23 }
 0x678   : > { %v1526_v24 = vadd.f32 %v1525_v22, %v1524_v51  ;;  %v2659_v22 = vrot.slane %v3629_v34, %v2658_v21 }
 0x6a3   : > { %v3198_v25 = vpop.f32.mrb[6].mxu0 }
 0x6a4   : > { %v2552_v26 = vmul.f32 %v3198_v25, %v3667_v6  ;;  %v2541_v27 = vpop.f32.mrb[7].mxu0 }
 0x6a5   : > { %v2551_v28 = vmul.f32 %v3656_v56, %v2541_v27 }
 0x6a7   : > { %v2553_v29 = vadd.f32 %v2552_v26, %v2551_v28 }
 0x6a9   : > { %v2554_v30 = vpack.c.bf16 %v2553_v29, %v1526_v24 }
 0x6ab   : > { %3204 = vmatmul.mubr.msk.bf16.vlgmr.msra.gmra.mrb[4].mxu1 %vm367_vm1, %v2554_v30  ;;  %v2721_v30 = vsub.s32 6, %v3623_v32 }
 0x6ac   : > { %3211 = vmatprep.mubr.msk.bf16.mxu1 %vm3481_vm8, %v3478_v55 }
 0x77e   : > { %v2608_v36 = vpop.f32.mrb[4].mxu1 }
 0x77f   : > { %v2609_v37 = vadd.f32 %v2608_v36, %v2558_v35  ;;  %v3205_v39 = vpop.f32.mrb[5].mxu1 }
 0x780   : > { %v2611_v57 = vpop.f32.mrb[6].mxu1 }
 0x781   : > { %v2612_v40 = vadd.f32 %v2611_v57, %v2558_v35  ;;  %v3206_v6 = vpop.f32.mrb[7].mxu1  ;;  %v2615_v41 = vadd.f32 %v2609_v37, %v3638_v44 }
 0x783   : > { %v2617_v56 = vsel %vm367_vm1, %v2615_v41, 0.0  ;;  %v2616_v42 = vadd.f32 %v2612_v40, %v3640_v45  ;;  %v3349_v45 = vld [vmem:[%s3703_s10 + $0x10] sm:$0xff]  }
 0x784   : > { %2618 = vadd.xlane.f32.xlu0 %v2617_v56  ;;  %3208 = vmatpush3.bf16.msra.mxu1 %v3349_v45 }
 0x785   : > { %v2620_v43 = vsel %vm367_vm1, %v2616_v42, 0.0  ;;  %3209 = vmatprep.subr.bf16.mxu1 %v3478_v55 }
 0x786   : > { %2621 = vadd.xlane.f32.xlu1 %v2620_v43 }
 0x788   : > { %3210 = vmatpush3.bf16.msra.mxu1 %v3350_v60 }
 0x797   : > { %2788 = vperm.xlu1 %3344, %v3607_v1  }
 0x811   : > { %v2619_v46 = vpop.xlane.xlu0 %2618 }
 0x812   : > { %v2623_v47 = vmul.f32 0.03125, %v2619_v46 }
 0x813   : > { %v2622_v49 = vpop.xlane.xlu1 %2621 }
 0x814   : > { %v2625_v50 = vsub.f32 %v2615_v41, %v2623_v47  ;;  %v2624_v52 = vmul.f32 0.03125, %v2622_v49 }
 0x816   : > { %v2626_v53 = vsub.f32 %v2616_v42, %v2624_v52  ;;  %v2627_v54 = vmul.f32 %v2625_v50, %v2625_v50 }
 0x817   : > { %v2789_v6 = vpop.permute.xlu1 %2788 }
 0x818   : > { %v2629_v58 = vsel %vm367_vm1, %v2627_v54, 0.0  ;;  %v2628_v44 = vmul.f32 %v2626_v53, %v2626_v53 }
 0x819   : > { %2630 = vadd.xlane.f32.xlu0 %v2629_v58 }
 0x81a   : > { %v2632_v59 = vsel %vm367_vm1, %v2628_v44, 0.0 }
 0x81d   : > { %2633 = vadd.xlane.f32.xlu0 %v2632_v59 }
 0x833   : > { %2783 = vperm.xlu0 %3343, %v3605_v0   ;;  %v2722_v0 = vrot.slane %v3629_v34, %v2721_v30 }
 0x8a6   : > { %v2631_v61 = vpop.xlane.xlu0 %2630 }
 0x8a7   : > { %v2635_v62 = vmul.f32 0.03125, %v2631_v61 }
 0x8a9   : > { %v2637_v63 = vadd.f32 1e-08, %v2635_v62 }
 0x8aa   : > { %v2634_v2 = vpop.xlane.xlu0 %2633 }
 0x8ab   : > { %3373 = vrsqrt.f32 %v2637_v63  ;;  %v2636_v48 = vmul.f32 0.03125, %v2634_v2 }
 0x8ad   : > { %v2638_v3 = vadd.f32 1e-08, %v2636_v48  ;;  %v2799_v48 = vld [vmem:[%s3833_s6] sm:$0x3] (!%p2977_p0) }
 0x8af   : > { %3375 = vrsqrt.f32 %v2638_v3  ;;  %v2829_v3 = vrot.slane (!%p2977_p0), %v2799_v48, %v397_v33 }
 0x8b2   : > { %v2784_v37 = vpop.permute.xlu0 %2783 }
 0x8b5   : > { %v3374_v5 = vpop.eup %3373 }
 0x8b6   : > { %v2641_v8 = vmul.f32 %v3374_v5, %v2625_v50 }
 0x8b8   : > { %v2647_v11 = vmul.f32 %v2646_v7, %v2641_v8 }
 0x8b9   : > { %v3376_v10 = vpop.eup %3375 }
 0x8ba   : > { %v2642_v12 = vmul.f32 %v3376_v10, %v2626_v53  ;;  %v2653_v15 = vadd.f32 %v2652_v13, %v2647_v11 }
 0x8bc   : > { %v2648_v14 = vmul.f32 %v2646_v7, %v2642_v12  ;;  %v2835_v7 = vrot.slane (!%p2977_p0), %v2799_v48, %v403_v38 }
 0x8be   : > { %v2654_v16 = vadd.f32 %v2652_v13, %v2648_v14 }
 0x8c0   : > { %v2655_v17 = vpack.c.bf16 %v2654_v16, %v2653_v15 }
 0x8c2   : > { %3212 = vmatmul.mubr.msk.bf16.vlgmr.msra.gmra.mrb[8].mxu1 %vm367_vm1, %v2655_v17 }
 0x995   : > { %v2709_v23 = vpop.f32.mrb[8].mxu1 }
 0x996   : > { %v2710_v51 = vadd.f32 %v2709_v23, %v2659_v22  ;;  %v3213_v24 = vpop.f32.mrb[9].mxu1 }
 0x997   : > { %v2712_v25 = vpop.f32.mrb[10].mxu1 }
 0x998   : > { %v2713_v26 = vadd.f32 %v2712_v25, %v2659_v22  ;;  %v3214_v27 = vpop.f32.mrb[11].mxu1  ;;  %v2716_v55 = vmax.f32 %v2710_v51, 0.0 }
 0x99a   : > { %v2717_v28 = vmax.f32 %v2713_v26, 0.0 }
 0x99c   : > { %v2718_v29 = vpack.c.bf16 %v2717_v28, %v2716_v55 }
 0x99e   : > { %3220 = vmatmul.mubr.msk.bf16.vlgmr.msra.gmra.mrb[8].mxu0 %vm367_vm1, %v2718_v29 }
 0xa71   : > { %v2772_v1 = vpop.f32.mrb[8].mxu0 }
 0xa72   : > { %v2773_v31 = vadd.f32 %v2772_v1, %v2722_v0  ;;  %v3221_v35 = vpop.f32.mrb[9].mxu0 }
 0xa73   : > { %v2775_v36 = vpop.f32.mrb[10].mxu0 }
 0xa74   : > { %v2776_v39 = vadd.f32 %v2775_v36, %v2722_v0  ;;  %v3222_v57 = vpop.f32.mrb[11].mxu0  ;;  %v2779_v40 = vadd.f32 %v2773_v31, %v2653_v15  ;;  %2798 = sbr.rel (%p2977_p0) target bundleno = 2998 (0xbb6), region = 56 }
 0xa76   : > { %v2791_v41 = vmul.f32 %v2784_v37, %v2779_v40  ;;  %v2780_v56 = vadd.f32 %v2776_v39, %v2654_v16 }
 0xa78   : > { %2793 = vst.msk [vmem:[#allocation2] sm:$0xff] %vm367_vm1, %v2791_v41  ;;  %v2792_v42 = vmul.f32 %v2789_v6, %v2780_v56  ;;  %v2800_v34 = vsel (!%p2977_p0), %vm367_vm1, %v2791_v41, 0.0 }
 0xa79   : > { %2801 = vadd.xlane.f32.xlu0 (!%p2977_p0), %v2800_v34 }
 0xa7a   : > { %2794 = vst.msk [vmem:[#allocation2 + $0x8] sm:$0xff] %vm367_vm1, %v2792_v42  ;;  %v2803_v43 = vsel (!%p2977_p0), %vm367_vm1, %v2792_v42, 0.0 }
 0xa7d   : > { %2804 = vadd.xlane.f32.xlu0 %v2803_v43 }
 0xb06   : > { %v2802_v46 = vpop.xlane.xlu0 %2801 }
 0xb07   : > { %v2806_v47 = vmul.f32 0.03125, %v2802_v46 }
 0xb09   : > { %v2808_v49 = vsub.f32 %v2791_v41, %v2806_v47 }
 0xb0a   : > { %v2805_v50 = vpop.xlane.xlu0 %2804 }
 0xb0b   : > { %v2807_v52 = vmul.f32 0.03125, %v2805_v50  ;;  %v2810_v53 = vmul.f32 %v2808_v49, %v2808_v49 }
 0xb0d   : > { %v2809_v54 = vsub.f32 %v2792_v42, %v2807_v52  ;;  %v2812_v58 = vsel %vm367_vm1, %v2810_v53, 0.0 }
 0xb0e   : > { %2813 = vadd.xlane.f32.xlu1 %v2812_v58 }
 0xb0f   : > { %v2811_v44 = vmul.f32 %v2809_v54, %v2809_v54 }
 0xb11   : > { %v2815_v59 = vsel %vm367_vm1, %v2811_v44, 0.0 }
 0xb12   : > { %2816 = vadd.xlane.f32.xlu1 %v2815_v59 }
 0xb9b   : > { %v2814_v45 = vpop.xlane.xlu1 %2813 }
 0xb9c   : > { %v2818_v60 = vmul.f32 0.03125, %v2814_v45 }
 0xb9e   : > { %v2820_v61 = vadd.f32 1e-08, %v2818_v60 }
 0xb9f   : > { %v2817_v62 = vpop.xlane.xlu1 %2816 }
 0xba0   : > { %3377 = vrsqrt.f32 %v2820_v61  ;;  %v2819_v63 = vmul.f32 0.03125, %v2817_v62 }
 0xba2   : > { %v2821_v2 = vadd.f32 1e-08, %v2819_v63 }
 0xba4   : > { %3379 = vrsqrt.f32 %v2821_v2 }
 0xbaa   : > { %v3378_v4 = vpop.eup %3377 }
 0xbab   : > { %v2824_v5 = vmul.f32 %v3378_v4, %v2808_v49 }
 0xbad   : > { %v2830_v8 = vmul.f32 %v2829_v3, %v2824_v5 }
 0xbae   : > { %v3380_v9 = vpop.eup %3379 }
 0xbaf   : > { %v2836_v10 = vadd.f32 %v2835_v7, %v2830_v8  ;;  %v2825_v11 = vmul.f32 %v3380_v9, %v2809_v54 }
 0xbb1   : > { %2838 = vst.msk [vmem:[%s3609_s16] sm:$0xff] %vm367_vm1, %v2836_v10  ;;  %v2831_v12 = vmul.f32 %v2829_v3, %v2825_v11 }
 0xbb3   : > { %v2837_v13 = vadd.f32 %v2835_v7, %v2831_v12 }
 0xbb5   : > { %2839 = vst.msk [vmem:[%s3609_s16 + $0x8] sm:$0xff] %vm367_vm1, %v2837_v13 }
 0xbb6 PF: > { %s2985_s12 = sshll.u32 %s3463_s28, 8  ;;  %s2854_s22 = sshll.u32 %s3609_s16, 4  ;;  %s3771_s22 = int_to_ptr.vmem [resolvable:$true] %s2854_s22 }
 0xbb7   : > { %s3768_s21 = scalar_lea.hbm %s3834_s7, %s2985_s12  ;;  %s3775_s23 = scalar_lea.sflag [#allocation4], %s298_s18 }
 0xbb8   : > { %s3381_s9 = scalar_lea.vmem %s3771_s22, 256  ;;  %s3483_s28 = smov [#allocation3]  }
 0xbb9   : > { %p3382_p1 = scmp.ne.s32.totalorder %s3771_s22, %s3381_s9  ;;  %s3385_s10 = sshll.u32 %s3483_s28, 4  ;;  %s3386_s10 = int_to_ptr.vmem [resolvable:$false] %s3385_s10 }
 0xbba   : > { %s3387_s27 = scalar_lea.vmem %s3386_s10, 512  ;;  %p3388_p5 = scmp.lt.s32.totalorder %s3771_s22, %s3386_s10 }
 0xbbb   : > { %p3383_p2 = pnand %p3382_p1, %p3575_p3  ;;  %p3389_p6 = scmp.lt.s32.totalorder %s3387_s27, %s3381_s9 }
 0xbbd   : > { %p3384_p4 = pneg %p3383_p2  ;;  %p3390_p7 = por %p3389_p6, %p3388_p5 }
 0xbbf   : > { %p3391_p8 = pnand %p3390_p7, %p3384_p4 }
 0xbc1   : > { %3394 = shalt.err (!%p3391_p8)
}
 0xbc2   : > { %s3395_s18 = scalar_lea.hbm %s3768_s21, 256  ;;  %s3399_s12 = scalar_lea.hbm %s3834_s7, 512 }
 0xbc3   : > { %p3396_p10 = scmp.ne.s32.totalorder %s3768_s21, %s3395_s18  ;;  %p3400_p13 = scmp.lt.u32.totalorder %s3768_s21, %s3834_s7 }
 0xbc4   : > { %p3401_p0 = scmp.lt.u32.totalorder %s3399_s12, %s3395_s18  ;;  %p3403_p2 = scmp.lt.u32.totalorder %s3395_s18, %s3768_s21 }
 0xbc5   : > { %p3397_p11 = pnand %p3396_p10, %p3575_p3 }
 0xbc6   : > { %p3402_p1 = por %p3401_p0, %p3400_p13 }
 0xbc7   : > { %p3398_p12 = pneg %p3397_p11 }
 0xbc8   : > { %p3404_p4 = por %p3403_p2, %p3402_p1 }
 0xbca   : > { %p3405_p5 = pnand %p3404_p4, %p3398_p12 }
 0xbcc   : > { %3408 = shalt.err (!%p3405_p5)
}
 0xbcd   : > { %s3484_s9 = smov 128   ;;  %s3485_s28 = smov 8  }
 0xbce   : > { %3263 = dma.vmem_to_hbm [thread:$0]  (%p3575_p3), %s3771_s22, 256, %s3768_s21, %s3775_s23, %s3484_s9, %s3484_s9, %s3485_s28  }
 0xbcf PF: > { %p3269_p6 = scmp.ge.s32.totalorder %s3475_s8, 2  ;;  %s2869_s10 = sand.u32 1, %s3447_s24  }
 0xbd0   : > { %s2870_s27 = scalar_lea.sflag [#allocation4], %s2869_s10 }
 0xbd1   : > { %p3266_p7 = pnand %p3269_p6, %p3585_p9 }
 0xbd3   : > { %3442 = dma.done.wait (!%p3266_p7), %s2870_s27, 256  }
 0xbd4   : > { %3444 = vsyncadd (!%p3266_p7), %s2870_s27, 4294967040  ;;  %s20_s8 = sadd.s32 1, %s3475_s8   ;;  %s3839_s13 = sld [smem:[#allocation6_spill]] }
 0xbd5   : > { %p17_p8 = scmp.ge.s32.totalorder %s20_s8, 6   ;;  %s3840_s24 = smov %s3451_s25 }
 0xbd6   : > { %s3841_s25 = smov %s3455_s26  ;;  %s3842_s26 = smov %s3593_s17 }
 0xbd7   : > { %s3843_s27 = smov %s3467_s29  ;;  %s3844_s28 = smov %s3471_s30 }
 0xbd8   : > { %s3845_s29 = smov %s3848_s11  ;;  %19 = sbr.rel (!%p17_p8) target bundleno = 5 (0x5), region = 98 }
 0xbda   : > { %s3846_s30 = smov %s3839_s13 }
 0xbdf   :  { %2875 = vsyncpa [#allocation4], 1 }
 0xbe0   :  { %2877 = vsyncpa [#allocation4 + $0x1], 1 }

</bundles_post_ra>
